<compile_context>
chip_gen: v7x
topology: tpu7x:2x2x1
jax: 0.10.0
libtpu: 0.0.40
codegen_flags: <defaults>
</compile_context>

<pallas_src>
import math
import functools

import jax
import jax.numpy as jnp
from jax import lax
from jax.experimental import pallas as pl
from jax.experimental.pallas import tpu as pltpu


# ----------------------------- kernel helpers ------------------------------

def _layernorm(x, gamma, beta, eps):
    # torch.nn.LayerNorm over last dim (biased variance), eps=config.layer_norm_eps
    mu = jnp.mean(x, axis=-1, keepdims=True)
    var = jnp.mean((x - mu) ** 2, axis=-1, keepdims=True)
    return (x - mu) * lax.rsqrt(var + eps) * gamma + beta


def _erf(z):
    # Abramowitz & Stegun 7.1.26 rational approximation (|err| < 1.5e-7),
    # built from exp + elementary ops only (portable Mosaic lowering).
    a1, a2, a3, a4, a5 = (0.254829592, -0.284496736, 1.421413741,
                          -1.453152027, 1.061405429)
    p = 0.3275911
    neg = z < 0.0
    za = jnp.where(neg, -z, z)
    t = 1.0 / (1.0 + p * za)
    poly = ((((a5 * t + a4) * t + a3) * t + a2) * t + a1) * t
    e = 1.0 - poly * jnp.exp(-za * za)
    return jnp.where(neg, -e, e)


def _gelu_exact(x):
    # HF ACT2FN["gelu"] == exact erf GELU
    return 0.5 * x * (1.0 + _erf(x * (1.0 / math.sqrt(2.0))))


# ------------------------------ Pallas kernel ------------------------------

def bert_layer_kernel(x_ref, mask_ref,
                      wqkv_ref, bqkv_ref,
                      wo_ref, bo_ref, g1_ref, b1_ref,
                      wi_ref, bi_ref, wd_ref, bd_ref, g2_ref, b2_ref,
                      out_ref,
                      qkv_g_ref, ctx_g_ref, ffn_acc_ref,
                      *, num_heads, head_dim, heads_per_group, eps,
                      head_unroll, ffn_unroll):
    S = x_ref.shape[1]
    H = wo_ref.shape[0]
    gw = heads_per_group * head_dim              # lane width of one head group
    n_groups = num_heads // heads_per_group
    n_chunks = wi_ref.shape[0]

    x = x_ref[0].astype(jnp.float32)             # (S, H) residual path, fp32
    mask_row = mask_ref[0].astype(jnp.float32)   # (1, S) additive mask row

    # --- fused Q/K/V projection: single (S,H)x(H,3H) bf16 MXU matmul ---------
    # (1/sqrt(head_dim) is already folded into the query weights/bias.)
    x_bf = x.astype(jnp.bfloat16)
    qkv = jnp.dot(x_bf, wqkv_ref[...],
                  preferred_element_type=jnp.float32) + bqkv_ref[...]

    # Distribute into head-group-major scratch: group g of q / k / v lives at
    # qkv_g_ref[g], qkv_g_ref[n_groups+g], qkv_g_ref[2*n_groups+g].  Slab
    # writes are full-width (lane-dense); the slices below are register slices
    # at group-width (<=128-lane) aligned offsets.
    for j in range(3 * n_groups):
        qkv_g_ref[j] = qkv[:, j * gw:(j + 1) * gw].astype(jnp.bfloat16)

    # --- attention over head groups (fori_loop bounds live ranges) -----------
    def attn_group(g, carry):
        qg = qkv_g_ref[g]                        # (S, gw) bf16, lane-dense load
        kg = qkv_g_ref[n_groups + g]
        vg = qkv_g_ref[2 * n_groups + g]
        parts = []
        for hh in range(heads_per_group):        # tiny static in-register split
            sl = slice(hh * head_dim, (hh + 1) * head_dim)
            qh, kh, vh = qg[:, sl], kg[:, sl], vg[:, sl]
            # q @ k^T without an explicit transpose (contract last dims).
            s = lax.dot_general(qh, kh, (((1,), (1,)), ((), ())),
                                preferred_element_type=jnp.float32)
            s = s + mask_row                     # (S,S) + (1,S) broadcast
            s = s - jnp.max(s, axis=-1, keepdims=True)
            p = jnp.exp(s)                       # fp32 softmax numerics
            p = p * pl.reciprocal(jnp.sum(p, axis=-1, keepdims=True),
                                  approx=True)   # inference-grade reciprocal
            parts.append(jnp.dot(p.astype(jnp.bfloat16), vh,
                                 preferred_element_type=jnp.float32))
        ctx_g = parts[0] if heads_per_group == 1 else jnp.concatenate(parts, -1)
        ctx_g_ref[g] = ctx_g.astype(jnp.bfloat16)  # lane-dense slab store
        return carry

    lax.fori_loop(0, n_groups, attn_group, 0, unroll=head_unroll)

    # --- single output projection (K = H, full MXU depth) --------------------
    if n_groups == 1:
        ctx = ctx_g_ref[0]
    else:
        ctx = jnp.concatenate([ctx_g_ref[g] for g in range(n_groups)], axis=-1)
    attn = jnp.dot(ctx, wo_ref[...],
                   preferred_element_type=jnp.float32) + bo_ref[...]

    # --- BertSelfOutput: residual + LayerNorm (fp32) --------------------------
    y = _layernorm(attn + x, g1_ref[...], b1_ref[...], eps)

    # --- FFN, blocked over the intermediate dimension (fori_loop) -------------
    y_bf = y.astype(jnp.bfloat16)
    ffn_acc_ref[...] = jnp.broadcast_to(bd_ref[...], (S, H))   # init with bias

    def ffn_step(c, carry):
        ic = jnp.dot(y_bf, wi_ref[c],
                     preferred_element_type=jnp.float32) + bi_ref[c]
        ic = _gelu_exact(ic).astype(jnp.bfloat16)
        ffn_acc_ref[...] += jnp.dot(ic, wd_ref[c],
                                    preferred_element_type=jnp.float32)
        return carry

    lax.fori_loop(0, n_chunks, ffn_step, 0, unroll=ffn_unroll)

    # --- BertOutput: residual + LayerNorm (fp32) -------------------------------
    out = _layernorm(ffn_acc_ref[...] + y, g2_ref[...], b2_ref[...], eps)
    out_ref[0] = out.astype(out_ref.dtype)


# ------------------------------ JAX wrappers --------------------------------

_PACKED_ORDER = ("wqkv", "bqkv", "wo", "bo", "g1", "b1",
                 "wi", "bi", "wd", "bd", "g2", "b2")


def _vmem_budget_bytes():
    """Per-generation VMEM limit: ~3/4 of physical, capped at 96 MiB
    (v5e/v6e: 96 MiB of 128 MiB; v7x: 48 MiB of 64 MiB)."""
    try:
        phys = int(pltpu.get_tpu_info().vmem_capacity_bytes)
    except Exception:
        phys = 64 * 1024 * 1024
    return int(min(96 * 1024 * 1024, (phys * 3) // 4))


def _default_max_ffn_chunk():
    """Bigger FFN chunks on big-VMEM chips (fewer ffn_acc passes, wider N)."""
    try:
        phys = int(pltpu.get_tpu_info().vmem_capacity_bytes)
    except Exception:
        phys = 64 * 1024 * 1024
    return 1024 if phys >= 96 * 1024 * 1024 else 512


def _pick_ffn_chunk(intermediate, max_chunk):
    """Largest multiple-of-128 divisor of `intermediate` <= max_chunk; never
    silently falls back to the full (S, I) activation for standard sizes."""
    if intermediate <= max_chunk:
        return intermediate
    best = 0
    for c in range(128, max_chunk + 1, 128):
        if intermediate % c == 0:
            best = c
    if best:
        return best
    for c in range(max_chunk, 127, -1):          # nonstandard I fallback
        if intermediate % c == 0:
            return c
    return intermediate


def _pick_heads_per_group(num_heads, head_dim):
    """Largest divisor of num_heads whose group width fits in 128 lanes."""
    for cand in range(num_heads, 0, -1):
        if num_heads % cand == 0 and cand * head_dim <= 128:
            return cand
    return 1


def pack_layer_params(params, num_heads, max_ffn_chunk=512):
    """Pack torch-style per-layer params into kernel form:
       - fuse wq/wk/wv -> (H, 3H) bf16, biases -> (1, 3H) fp32
       - fold 1/sqrt(head_dim) into the query weight/bias
       - pre-chunk wi/bi/wd along the intermediate dim so the kernel's FFN
         loop only does leading-dim indexing
       - cast matmul weights to bf16, keep biases / LN params fp32."""
    H = params["wq"].shape[0]
    inter = params["wi"].shape[1]
    head_dim = H // num_heads
    scale = 1.0 / math.sqrt(head_dim)

    wqkv = jnp.concatenate(
        [params["wq"] * scale, params["wk"], params["wv"]], axis=1
    ).astype(jnp.bfloat16)
    bqkv = jnp.concatenate(
        [params["bq"] * scale, params["bk"], params["bv"]], axis=1
    ).astype(jnp.float32)

    chunk = _pick_ffn_chunk(inter, max_ffn_chunk)
    n_chunks = inter // chunk
    wi = (params["wi"].astype(jnp.bfloat16)
          .reshape(H, n_chunks, chunk).transpose(1, 0, 2))      # (nc, H, chunk)
    bi = params["bi"].astype(jnp.float32).reshape(n_chunks, 1, chunk)
    wd = params["wd"].astype(jnp.bfloat16).reshape(n_chunks, chunk, H)

    return {
        "wqkv": wqkv, "bqkv": bqkv,
        "wo": params["wo"].astype(jnp.bfloat16), "bo": params["bo"],
        "g1": params["g1"], "b1": params["b1"],
        "wi": wi, "bi": bi, "wd": wd, "bd": params["bd"],
        "g2": params["g2"], "b2": params["b2"],
    }


def _const_spec(w):
    # Constant-index weight block: same block every grid step -> single-buffer
    # (pl.Buffered(1)) so the second pipeline buffer is never allocated.
    nd = w.ndim
    return pl.BlockSpec(w.shape, lambda b, _nd=nd: (0,) * _nd,
                        pipeline_mode=pl.Buffered(1))


def bert_layer_pallas(x, mask, packed, *, num_heads, eps, out_dtype=None):
    B, S, H = x.shape
    assert H % num_heads == 0
    head_dim = H // num_heads
    heads_per_group = _pick_heads_per_group(num_heads, head_dim)
    n_groups = num_heads // heads_per_group
    gw = heads_per_group * head_dim
    n_chunks = packed["wi"].shape[0]
    out_dtype = x.dtype if out_dtype is None else out_dtype

    weights = [packed[name] for name in _PACKED_ORDER]

    in_specs = [pl.BlockSpec((1, S, H), lambda b: (b, 0, 0)),
                pl.BlockSpec((1, 1, S), lambda b: (b, 0, 0))]
    in_specs += [_const_spec(w) for w in weights]

    kernel = functools.partial(
        bert_layer_kernel, num_heads=num_heads, head_dim=head_dim,
        heads_per_group=heads_per_group, eps=eps,
        head_unroll=min(2, n_groups), ffn_unroll=min(2, n_chunks))

    return pl.pallas_call(
        kernel,
        out_shape=jax.ShapeDtypeStruct((B, S, H), out_dtype),
        grid=(B,),
        in_specs=in_specs,
        out_specs=pl.BlockSpec((1, S, H), lambda b: (b, 0, 0)),
        scratch_shapes=[
            pltpu.VMEM((3 * n_groups, S, gw), jnp.bfloat16),  # q/k/v, group-major
            pltpu.VMEM((n_groups, S, gw), jnp.bfloat16),       # per-group context
            pltpu.VMEM((S, H), jnp.float32),                   # FFN accumulator
        ],
        compiler_params=pltpu.CompilerParams(
            dimension_semantics=("parallel",),
            vmem_limit_bytes=_vmem_budget_bytes()),
    )(x, mask, *weights)


def bert_encoder_pallas(hidden_states, attention_mask, layer_params, *,
                        num_heads, eps=1e-12,
                        interlayer_dtype=jnp.bfloat16):
    # BertEncoder.forward: sequentially apply num_hidden_layers BertLayers.
    # (output_attentions / output_hidden_states / cache plumbing omitted;
    #  returns last_hidden_state only.)
    # Inter-layer activations travel in bf16 (halved HBM traffic); the final
    # layer emits the caller's dtype.  All LN/softmax math is fp32 in-kernel.
    # TODO(synk): cross-pallas_call prefetch of next layer's weights (P10).
    max_chunk = _default_max_ffn_chunk()
    packed_layers = [pack_layer_params(p, num_heads, max_ffn_chunk=max_chunk)
                     for p in layer_params]
    out_dtype = hidden_states.dtype
    x = hidden_states
    n = len(packed_layers)
    for i, p in enumerate(packed_layers):
        layer_dtype = out_dtype if i == n - 1 else interlayer_dtype
        x = bert_layer_pallas(x, attention_mask, p, num_heads=num_heads,
                              eps=eps, out_dtype=layer_dtype)
    return x


# ---------------------------- reference (pure JAX, fp32) ---------------------

def bert_encoder_reference(x, mask, layer_params, *, num_heads, eps=1e-12):
    B, S, H = x.shape
    hd = H // num_heads

    def ln(v, g, b):
        mu = v.mean(-1, keepdims=True)
        var = ((v - mu) ** 2).mean(-1, keepdims=True)
        return (v - mu) / jnp.sqrt(var + eps) * g + b

    for p in layer_params:
        q = (x @ p["wq"] + p["bq"]).reshape(B, S, num_heads, hd).transpose(0, 2, 1, 3)
        k = (x @ p["wk"] + p["bk"]).reshape(B, S, num_heads, hd).transpose(0, 2, 1, 3)
        v = (x @ p["wv"] + p["bv"]).reshape(B, S, num_heads, hd).transpose(0, 2, 1, 3)
        s = jnp.einsum("bhqd,bhkd->bhqk", q, k) / math.sqrt(hd)
        s = s + mask[:, None, :, :]
        pr = jax.nn.softmax(s, axis=-1)
        ctx = jnp.einsum("bhqk,bhkd->bhqd", pr, v).transpose(0, 2, 1, 3).reshape(B, S, H)
        a = ln(ctx @ p["wo"] + p["bo"] + x, p["g1"], p["b1"])
        inter = jax.nn.gelu(a @ p["wi"] + p["bi"], approximate=False)
        x = ln(inter @ p["wd"] + p["bd"] + a, p["g2"], p["b2"])
    return x


# ------------------------------ param init ----------------------------------

def init_layer_params(key, hidden, intermediate):
    ks = jax.random.split(key, 14)
    std = 0.02

    def lin(k, din, dout):
        return jax.random.normal(k, (din, dout), jnp.float32) * std

    def bias(k, d):
        return jax.random.normal(k, (1, d), jnp.float32) * std

    return {
        "wq": lin(ks[0], hidden, hidden),        "bq": bias(ks[1], hidden),
        "wk": lin(ks[2], hidden, hidden),        "bk": bias(ks[3], hidden),
        "wv": lin(ks[4], hidden, hidden),        "bv": bias(ks[5], hidden),
        "wo": lin(ks[6], hidden, hidden),        "bo": bias(ks[7], hidden),
        "g1": jnp.ones((1, hidden), jnp.float32),
        "b1": jnp.zeros((1, hidden), jnp.float32),
        "wi": lin(ks[8], hidden, intermediate),  "bi": bias(ks[9], intermediate),
        "wd": lin(ks[10], intermediate, hidden), "bd": bias(ks[11], hidden),
        "g2": jnp.ones((1, hidden), jnp.float32),
        "b2": jnp.zeros((1, hidden), jnp.float32),
    }


# ---------------------------------- main -------------------------------------

if __name__ == "__main__":
    B, S, H = 2, 8, 32
    NUM_HEADS = 4
    INTERMEDIATE = 64
    NUM_LAYERS = 2
    EPS = 1e-12

    key = jax.random.PRNGKey(0)
    kx, *kls = jax.random.split(key, 1 + NUM_LAYERS)

    hidden_states = jax.random.normal(kx, (B, S, H), jnp.float32)

    # padding mask: mask out last 2 tokens of batch element 1, as an additive
    # extended mask (like BERT's (1 - mask) * -10000), shape [B, 1, S].
    keep = jnp.ones((B, S), jnp.float32).at[1, S - 2:].set(0.0)
    attention_mask = ((1.0 - keep) * -10000.0).reshape(B, 1, S)

    layer_params = [init_layer_params(kls[i], H, INTERMEDIATE)
                    for i in range(NUM_LAYERS)]

    out = bert_encoder_pallas(hidden_states, attention_mask, layer_params,
                              num_heads=NUM_HEADS, eps=EPS)
    out = jax.block_until_ready(out)

    ref = bert_encoder_reference(hidden_states, attention_mask, layer_params,
                                 num_heads=NUM_HEADS, eps=EPS)
    assert out.shape == (B, S, H)
    # bf16 matmul operands + bf16 inter-layer activations + approx reciprocal
    # -> loosen tolerance vs the fp32 reference (inference-grade numerics).
    assert jnp.allclose(out, ref, atol=5e-2, rtol=5e-2), (
        "Pallas output mismatch: max abs err = "
        f"{float(jnp.max(jnp.abs(out - ref)))}")

    print("KERNEL_OK")
</pallas_src>

<mosaic_0001>
module attributes {stable_mosaic.version = 11 : i64} {
  func.func @bert_layer_kernel(%arg0: i32, %arg1: memref<1x8x32xf32, #tpu.memory_space<vmem>>, %arg2: memref<1x1x8xf32, #tpu.memory_space<vmem>>, %arg3: memref<32x96xbf16, #tpu.memory_space<vmem>>, %arg4: memref<1x96xf32, #tpu.memory_space<vmem>>, %arg5: memref<32x32xbf16, #tpu.memory_space<vmem>>, %arg6: memref<1x32xf32, #tpu.memory_space<vmem>>, %arg7: memref<1x32xf32, #tpu.memory_space<vmem>>, %arg8: memref<1x32xf32, #tpu.memory_space<vmem>>, %arg9: memref<1x32x64xbf16, #tpu.memory_space<vmem>>, %arg10: memref<1x1x64xf32, #tpu.memory_space<vmem>>, %arg11: memref<1x64x32xbf16, #tpu.memory_space<vmem>>, %arg12: memref<1x32xf32, #tpu.memory_space<vmem>>, %arg13: memref<1x32xf32, #tpu.memory_space<vmem>>, %arg14: memref<1x32xf32, #tpu.memory_space<vmem>>, %arg15: memref<1x8x32xbf16, #tpu.memory_space<vmem>>, %arg16: memref<3x8x32xbf16, #tpu.memory_space<vmem>>, %arg17: memref<1x8x32xbf16, #tpu.memory_space<vmem>>, %arg18: memref<8x32xf32, #tpu.memory_space<vmem>>) attributes {dimension_semantics = [#tpu.dimension_semantics<parallel>], iteration_bounds = array<i64: 2>, scalar_prefetch = 0 : i64, scratch_operands = 3 : i64, tpu.core_type = #tpu.core_type<tc>, window_params = [{transform_indices = @transform_0, window_bounds = array<i64: 1, 8, 32>}, {transform_indices = @transform_1, window_bounds = array<i64: 1, 1, 8>}, {pipeline_mode = #tpu.pipeline_mode<synchronous>, transform_indices = @transform_2, window_bounds = array<i64: 32, 96>}, {pipeline_mode = #tpu.pipeline_mode<synchronous>, transform_indices = @transform_3, window_bounds = array<i64: 1, 96>}, {pipeline_mode = #tpu.pipeline_mode<synchronous>, transform_indices = @transform_4, window_bounds = array<i64: 32, 32>}, {pipeline_mode = #tpu.pipeline_mode<synchronous>, transform_indices = @transform_5, window_bounds = array<i64: 1, 32>}, {pipeline_mode = #tpu.pipeline_mode<synchronous>, transform_indices = @transform_6, window_bounds = array<i64: 1, 32>}, {pipeline_mode = #tpu.pipeline_mode<synchronous>, transform_indices = @transform_7, window_bounds = array<i64: 1, 32>}, {pipeline_mode = #tpu.pipeline_mode<synchronous>, transform_indices = @transform_8, window_bounds = array<i64: 1, 32, 64>}, {pipeline_mode = #tpu.pipeline_mode<synchronous>, transform_indices = @transform_9, window_bounds = array<i64: 1, 1, 64>}, {pipeline_mode = #tpu.pipeline_mode<synchronous>, transform_indices = @transform_10, window_bounds = array<i64: 1, 64, 32>}, {pipeline_mode = #tpu.pipeline_mode<synchronous>, transform_indices = @transform_11, window_bounds = array<i64: 1, 32>}, {pipeline_mode = #tpu.pipeline_mode<synchronous>, transform_indices = @transform_12, window_bounds = array<i64: 1, 32>}, {pipeline_mode = #tpu.pipeline_mode<synchronous>, transform_indices = @transform_13, window_bounds = array<i64: 1, 32>}, {transform_indices = @transform_14, window_bounds = array<i64: 1, 8, 32>}]} {
    %c0 = arith.constant 0 : index
    %c0_0 = arith.constant 0 : index
    %c0_1 = arith.constant 0 : index
    %0 = vector.load %arg1[%c0, %c0_0, %c0_1] : memref<1x8x32xf32, #tpu.memory_space<vmem>>, vector<1x8x32xf32>
    %1 = vector.shape_cast %0 : vector<1x8x32xf32> to vector<8x32xf32>
    %c0_2 = arith.constant 0 : index
    %c0_3 = arith.constant 0 : index
    %c0_4 = arith.constant 0 : index
    %2 = vector.load %arg2[%c0_2, %c0_3, %c0_4] : memref<1x1x8xf32, #tpu.memory_space<vmem>>, vector<1x1x8xf32>
    %3 = vector.shape_cast %2 : vector<1x1x8xf32> to vector<1x8xf32>
    %4 = arith.truncf %1 : vector<8x32xf32> to vector<8x32xbf16>
    %c0_5 = arith.constant 0 : index
    %c0_6 = arith.constant 0 : index
    %5 = vector.load %arg3[%c0_5, %c0_6] : memref<32x96xbf16, #tpu.memory_space<vmem>>, vector<32x96xbf16>
    %cst = arith.constant dense<0.000000e+00> : vector<8x96xf32>
    %6 = tpu.matmul %4, %5, %cst {dimension_numbers = #tpu.dot_dimension_numbers<[1], [0], [0], [1], [0, 0, 1, 1], [], []>} : vector<8x32xbf16>, vector<32x96xbf16>, vector<8x96xf32> -> vector<8x96xf32>
    %c0_7 = arith.constant 0 : index
    %c0_8 = arith.constant 0 : index
    %7 = vector.load %arg4[%c0_7, %c0_8] : memref<1x96xf32, #tpu.memory_space<vmem>>, vector<1x96xf32>
    %8 = vector.broadcast %7 : vector<1x96xf32> to vector<8x96xf32>
    %9 = arith.addf %6, %8 : vector<8x96xf32>
    %10 = vector.extract_strided_slice %9 {offsets = [0, 0], sizes = [8, 32], strides = [1, 1]} : vector<8x96xf32> to vector<8x32xf32>
    %11 = arith.truncf %10 : vector<8x32xf32> to vector<8x32xbf16>
    %c0_9 = arith.constant 0 : index
    %c0_10 = arith.constant 0 : index
    %c0_11 = arith.constant 0 : index
    %12 = vector.load %arg16[%c0_9, %c0_10, %c0_11] : memref<3x8x32xbf16, #tpu.memory_space<vmem>>, vector<1x8x32xbf16>
    %13 = vector.shape_cast %12 : vector<1x8x32xbf16> to vector<8x32xbf16>
    %14 = vector.shape_cast %11 : vector<8x32xbf16> to vector<1x8x32xbf16>
    tpu.vector_store %arg16[%c0_9, %c0_10, %c0_11], %14 {strides = array<i32>} : memref<3x8x32xbf16, #tpu.memory_space<vmem>>, vector<1x8x32xbf16>,
    %15 = vector.extract_strided_slice %9 {offsets = [0, 32], sizes = [8, 32], strides = [1, 1]} : vector<8x96xf32> to vector<8x32xf32>
    %16 = arith.truncf %15 : vector<8x32xf32> to vector<8x32xbf16>
    %c1 = arith.constant 1 : index
    %c0_12 = arith.constant 0 : index
    %c0_13 = arith.constant 0 : index
    %17 = vector.load %arg16[%c1, %c0_12, %c0_13] : memref<3x8x32xbf16, #tpu.memory_space<vmem>>, vector<1x8x32xbf16>
    %18 = vector.shape_cast %17 : vector<1x8x32xbf16> to vector<8x32xbf16>
    %19 = vector.shape_cast %16 : vector<8x32xbf16> to vector<1x8x32xbf16>
    tpu.vector_store %arg16[%c1, %c0_12, %c0_13], %19 {strides = array<i32>} : memref<3x8x32xbf16, #tpu.memory_space<vmem>>, vector<1x8x32xbf16>,
    %20 = vector.extract_strided_slice %9 {offsets = [0, 64], sizes = [8, 32], strides = [1, 1]} : vector<8x96xf32> to vector<8x32xf32>
    %21 = arith.truncf %20 : vector<8x32xf32> to vector<8x32xbf16>
    %c2 = arith.constant 2 : index
    %c0_14 = arith.constant 0 : index
    %c0_15 = arith.constant 0 : index
    %22 = vector.load %arg16[%c2, %c0_14, %c0_15] : memref<3x8x32xbf16, #tpu.memory_space<vmem>>, vector<1x8x32xbf16>
    %23 = vector.shape_cast %22 : vector<1x8x32xbf16> to vector<8x32xbf16>
    %24 = vector.shape_cast %21 : vector<8x32xbf16> to vector<1x8x32xbf16>
    tpu.vector_store %arg16[%c2, %c0_14, %c0_15], %24 {strides = array<i32>} : memref<3x8x32xbf16, #tpu.memory_space<vmem>>, vector<1x8x32xbf16>,
    %c0_i32 = arith.constant 0 : i32
    %25 = arith.index_cast %c0_i32 : i32 to index
    %c0_16 = arith.constant 0 : index
    %c0_17 = arith.constant 0 : index
    %26 = vector.load %arg16[%25, %c0_16, %c0_17] : memref<3x8x32xbf16, #tpu.memory_space<vmem>>, vector<1x8x32xbf16>
    %27 = vector.shape_cast %26 : vector<1x8x32xbf16> to vector<8x32xbf16>
    %c1_i32 = arith.constant 1 : i32
    %28 = arith.addi %c1_i32, %c0_i32 : i32
    %29 = arith.index_cast %28 : i32 to index
    %c0_18 = arith.constant 0 : index
    %c0_19 = arith.constant 0 : index
    %30 = vector.load %arg16[%29, %c0_18, %c0_19] : memref<3x8x32xbf16, #tpu.memory_space<vmem>>, vector<1x8x32xbf16>
    %31 = vector.shape_cast %30 : vector<1x8x32xbf16> to vector<8x32xbf16>
    %c2_i32 = arith.constant 2 : i32
    %32 = arith.addi %c2_i32, %c0_i32 : i32
    %33 = arith.index_cast %32 : i32 to index
    %c0_20 = arith.constant 0 : index
    %c0_21 = arith.constant 0 : index
    %34 = vector.load %arg16[%33, %c0_20, %c0_21] : memref<3x8x32xbf16, #tpu.memory_space<vmem>>, vector<1x8x32xbf16>
    %35 = vector.shape_cast %34 : vector<1x8x32xbf16> to vector<8x32xbf16>
    %36 = vector.extract_strided_slice %27 {offsets = [0, 0], sizes = [8, 8], strides = [1, 1]} : vector<8x32xbf16> to vector<8x8xbf16>
    %37 = vector.extract_strided_slice %31 {offsets = [0, 0], sizes = [8, 8], strides = [1, 1]} : vector<8x32xbf16> to vector<8x8xbf16>
    %38 = vector.extract_strided_slice %35 {offsets = [0, 0], sizes = [8, 8], strides = [1, 1]} : vector<8x32xbf16> to vector<8x8xbf16>
    %cst_22 = arith.constant dense<0.000000e+00> : vector<8x8xf32>
    %39 = tpu.matmul %36, %37, %cst_22 {dimension_numbers = #tpu.dot_dimension_numbers<[1], [1], [0], [0], [0, 0, 1, 0], [], []>} : vector<8x8xbf16>, vector<8x8xbf16>, vector<8x8xf32> -> vector<8x8xf32>
    %40 = vector.broadcast %3 : vector<1x8xf32> to vector<8x8xf32>
    %41 = arith.addf %39, %40 : vector<8x8xf32>
    %cst_23 = arith.constant dense<0xFF800000> : vector<8xf32>
    %42 = vector.multi_reduction <maximumf>, %41, %cst_23 [1] : vector<8x8xf32> to vector<8xf32>
    %43 = vector.shape_cast %42 : vector<8xf32> to vector<8x1xf32>
    %44 = vector.broadcast %43 : vector<8x1xf32> to vector<8x8xf32>
    %45 = arith.subf %41, %44 : vector<8x8xf32>
    %46 = math.exp %45 : vector<8x8xf32>
    %cst_24 = arith.constant dense<0.000000e+00> : vector<8xf32>
    %47 = vector.multi_reduction <add>, %46, %cst_24 [1] : vector<8x8xf32> to vector<8xf32>
    %48 = vector.shape_cast %47 : vector<8xf32> to vector<8x1xf32>
    %49 = tpu.reciprocal %48 {approx = true} : vector<8x1xf32> -> vector<8x1xf32>
    %50 = vector.broadcast %49 : vector<8x1xf32> to vector<8x8xf32>
    %51 = arith.mulf %46, %50 : vector<8x8xf32>
    %52 = arith.truncf %51 : vector<8x8xf32> to vector<8x8xbf16>
    %cst_25 = arith.constant dense<0.000000e+00> : vector<8x8xf32>
    %53 = tpu.matmul %52, %38, %cst_25 {dimension_numbers = #tpu.dot_dimension_numbers<[1], [0], [0], [1], [0, 0, 1, 1], [], []>} : vector<8x8xbf16>, vector<8x8xbf16>, vector<8x8xf32> -> vector<8x8xf32>
    %54 = vector.extract_strided_slice %27 {offsets = [0, 8], sizes = [8, 8], strides = [1, 1]} : vector<8x32xbf16> to vector<8x8xbf16>
    %55 = vector.extract_strided_slice %31 {offsets = [0, 8], sizes = [8, 8], strides = [1, 1]} : vector<8x32xbf16> to vector<8x8xbf16>
    %56 = vector.extract_strided_slice %35 {offsets = [0, 8], sizes = [8, 8], strides = [1, 1]} : vector<8x32xbf16> to vector<8x8xbf16>
    %cst_26 = arith.constant dense<0.000000e+00> : vector<8x8xf32>
    %57 = tpu.matmul %54, %55, %cst_26 {dimension_numbers = #tpu.dot_dimension_numbers<[1], [1], [0], [0], [0, 0, 1, 0], [], []>} : vector<8x8xbf16>, vector<8x8xbf16>, vector<8x8xf32> -> vector<8x8xf32>
    %58 = vector.broadcast %3 : vector<1x8xf32> to vector<8x8xf32>
    %59 = arith.addf %57, %58 : vector<8x8xf32>
    %cst_27 = arith.constant dense<0xFF800000> : vector<8xf32>
    %60 = vector.multi_reduction <maximumf>, %59, %cst_27 [1] : vector<8x8xf32> to vector<8xf32>
    %61 = vector.shape_cast %60 : vector<8xf32> to vector<8x1xf32>
    %62 = vector.broadcast %61 : vector<8x1xf32> to vector<8x8xf32>
    %63 = arith.subf %59, %62 : vector<8x8xf32>
    %64 = math.exp %63 : vector<8x8xf32>
    %cst_28 = arith.constant dense<0.000000e+00> : vector<8xf32>
    %65 = vector.multi_reduction <add>, %64, %cst_28 [1] : vector<8x8xf32> to vector<8xf32>
    %66 = vector.shape_cast %65 : vector<8xf32> to vector<8x1xf32>
    %67 = tpu.reciprocal %66 {approx = true} : vector<8x1xf32> -> vector<8x1xf32>
    %68 = vector.broadcast %67 : vector<8x1xf32> to vector<8x8xf32>
    %69 = arith.mulf %64, %68 : vector<8x8xf32>
    %70 = arith.truncf %69 : vector<8x8xf32> to vector<8x8xbf16>
    %cst_29 = arith.constant dense<0.000000e+00> : vector<8x8xf32>
    %71 = tpu.matmul %70, %56, %cst_29 {dimension_numbers = #tpu.dot_dimension_numbers<[1], [0], [0], [1], [0, 0, 1, 1], [], []>} : vector<8x8xbf16>, vector<8x8xbf16>, vector<8x8xf32> -> vector<8x8xf32>
    %72 = vector.extract_strided_slice %27 {offsets = [0, 16], sizes = [8, 8], strides = [1, 1]} : vector<8x32xbf16> to vector<8x8xbf16>
    %73 = vector.extract_strided_slice %31 {offsets = [0, 16], sizes = [8, 8], strides = [1, 1]} : vector<8x32xbf16> to vector<8x8xbf16>
    %74 = vector.extract_strided_slice %35 {offsets = [0, 16], sizes = [8, 8], strides = [1, 1]} : vector<8x32xbf16> to vector<8x8xbf16>
    %cst_30 = arith.constant dense<0.000000e+00> : vector<8x8xf32>
    %75 = tpu.matmul %72, %73, %cst_30 {dimension_numbers = #tpu.dot_dimension_numbers<[1], [1], [0], [0], [0, 0, 1, 0], [], []>} : vector<8x8xbf16>, vector<8x8xbf16>, vector<8x8xf32> -> vector<8x8xf32>
    %76 = vector.broadcast %3 : vector<1x8xf32> to vector<8x8xf32>
    %77 = arith.addf %75, %76 : vector<8x8xf32>
    %cst_31 = arith.constant dense<0xFF800000> : vector<8xf32>
    %78 = vector.multi_reduction <maximumf>, %77, %cst_31 [1] : vector<8x8xf32> to vector<8xf32>
    %79 = vector.shape_cast %78 : vector<8xf32> to vector<8x1xf32>
    %80 = vector.broadcast %79 : vector<8x1xf32> to vector<8x8xf32>
    %81 = arith.subf %77, %80 : vector<8x8xf32>
    %82 = math.exp %81 : vector<8x8xf32>
    %cst_32 = arith.constant dense<0.000000e+00> : vector<8xf32>
    %83 = vector.multi_reduction <add>, %82, %cst_32 [1] : vector<8x8xf32> to vector<8xf32>
    %84 = vector.shape_cast %83 : vector<8xf32> to vector<8x1xf32>
    %85 = tpu.reciprocal %84 {approx = true} : vector<8x1xf32> -> vector<8x1xf32>
    %86 = vector.broadcast %85 : vector<8x1xf32> to vector<8x8xf32>
    %87 = arith.mulf %82, %86 : vector<8x8xf32>
    %88 = arith.truncf %87 : vector<8x8xf32> to vector<8x8xbf16>
    %cst_33 = arith.constant dense<0.000000e+00> : vector<8x8xf32>
    %89 = tpu.matmul %88, %74, %cst_33 {dimension_numbers = #tpu.dot_dimension_numbers<[1], [0], [0], [1], [0, 0, 1, 1], [], []>} : vector<8x8xbf16>, vector<8x8xbf16>, vector<8x8xf32> -> vector<8x8xf32>
    %90 = vector.extract_strided_slice %27 {offsets = [0, 24], sizes = [8, 8], strides = [1, 1]} : vector<8x32xbf16> to vector<8x8xbf16>
    %91 = vector.extract_strided_slice %31 {offsets = [0, 24], sizes = [8, 8], strides = [1, 1]} : vector<8x32xbf16> to vector<8x8xbf16>
    %92 = vector.extract_strided_slice %35 {offsets = [0, 24], sizes = [8, 8], strides = [1, 1]} : vector<8x32xbf16> to vector<8x8xbf16>
    %cst_34 = arith.constant dense<0.000000e+00> : vector<8x8xf32>
    %93 = tpu.matmul %90, %91, %cst_34 {dimension_numbers = #tpu.dot_dimension_numbers<[1], [1], [0], [0], [0, 0, 1, 0], [], []>} : vector<8x8xbf16>, vector<8x8xbf16>, vector<8x8xf32> -> vector<8x8xf32>
    %94 = vector.broadcast %3 : vector<1x8xf32> to vector<8x8xf32>
    %95 = arith.addf %93, %94 : vector<8x8xf32>
    %cst_35 = arith.constant dense<0xFF800000> : vector<8xf32>
    %96 = vector.multi_reduction <maximumf>, %95, %cst_35 [1] : vector<8x8xf32> to vector<8xf32>
    %97 = vector.shape_cast %96 : vector<8xf32> to vector<8x1xf32>
    %98 = vector.broadcast %97 : vector<8x1xf32> to vector<8x8xf32>
    %99 = arith.subf %95, %98 : vector<8x8xf32>
    %100 = math.exp %99 : vector<8x8xf32>
    %cst_36 = arith.constant dense<0.000000e+00> : vector<8xf32>
    %101 = vector.multi_reduction <add>, %100, %cst_36 [1] : vector<8x8xf32> to vector<8xf32>
    %102 = vector.shape_cast %101 : vector<8xf32> to vector<8x1xf32>
    %103 = tpu.reciprocal %102 {approx = true} : vector<8x1xf32> -> vector<8x1xf32>
    %104 = vector.broadcast %103 : vector<8x1xf32> to vector<8x8xf32>
    %105 = arith.mulf %100, %104 : vector<8x8xf32>
    %106 = arith.truncf %105 : vector<8x8xf32> to vector<8x8xbf16>
    %cst_37 = arith.constant dense<0.000000e+00> : vector<8x8xf32>
    %107 = tpu.matmul %106, %92, %cst_37 {dimension_numbers = #tpu.dot_dimension_numbers<[1], [0], [0], [1], [0, 0, 1, 1], [], []>} : vector<8x8xbf16>, vector<8x8xbf16>, vector<8x8xf32> -> vector<8x8xf32>
    %108 = tpu.concatenate %53, %71, %89, %107 in 1 : vector<8x8xf32>, vector<8x8xf32>, vector<8x8xf32>, vector<8x8xf32> -> vector<8x32xf32>
    %109 = arith.truncf %108 : vector<8x32xf32> to vector<8x32xbf16>
    %110 = arith.index_cast %c0_i32 : i32 to index
    %c0_38 = arith.constant 0 : index
    %c0_39 = arith.constant 0 : index
    %111 = vector.load %arg17[%110, %c0_38, %c0_39] : memref<1x8x32xbf16, #tpu.memory_space<vmem>>, vector<1x8x32xbf16>
    %112 = vector.shape_cast %111 : vector<1x8x32xbf16> to vector<8x32xbf16>
    %113 = vector.shape_cast %109 : vector<8x32xbf16> to vector<1x8x32xbf16>
    tpu.vector_store %arg17[%110, %c0_38, %c0_39], %113 {strides = array<i32>} : memref<1x8x32xbf16, #tpu.memory_space<vmem>>, vector<1x8x32xbf16>,
    %c1_i32_40 = arith.constant 1 : i32
    %c0_41 = arith.constant 0 : index
    %c0_42 = arith.constant 0 : index
    %c0_43 = arith.constant 0 : index
    %114 = vector.load %arg17[%c0_41, %c0_42, %c0_43] : memref<1x8x32xbf16, #tpu.memory_space<vmem>>, vector<1x8x32xbf16>
    %115 = vector.shape_cast %114 : vector<1x8x32xbf16> to vector<8x32xbf16>
    %c0_44 = arith.constant 0 : index
    %c0_45 = arith.constant 0 : index
    %116 = vector.load %arg5[%c0_44, %c0_45] : memref<32x32xbf16, #tpu.memory_space<vmem>>, vector<32x32xbf16>
    %cst_46 = arith.constant dense<0.000000e+00> : vector<8x32xf32>
    %117 = tpu.matmul %115, %116, %cst_46 {dimension_numbers = #tpu.dot_dimension_numbers<[1], [0], [0], [1], [0, 0, 1, 1], [], []>} : vector<8x32xbf16>, vector<32x32xbf16>, vector<8x32xf32> -> vector<8x32xf32>
    %c0_47 = arith.constant 0 : index
    %c0_48 = arith.constant 0 : index
    %118 = vector.load %arg6[%c0_47, %c0_48] : memref<1x32xf32, #tpu.memory_space<vmem>>, vector<1x32xf32>
    %119 = vector.broadcast %118 : vector<1x32xf32> to vector<8x32xf32>
    %120 = arith.addf %117, %119 : vector<8x32xf32>
    %121 = arith.addf %120, %1 : vector<8x32xf32>
    %c0_49 = arith.constant 0 : index
    %c0_50 = arith.constant 0 : index
    %122 = vector.load %arg7[%c0_49, %c0_50] : memref<1x32xf32, #tpu.memory_space<vmem>>, vector<1x32xf32>
    %c0_51 = arith.constant 0 : index
    %c0_52 = arith.constant 0 : index
    %123 = vector.load %arg8[%c0_51, %c0_52] : memref<1x32xf32, #tpu.memory_space<vmem>>, vector<1x32xf32>
    %cst_53 = arith.constant dense<0.000000e+00> : vector<8xf32>
    %124 = vector.multi_reduction <add>, %121, %cst_53 [1] : vector<8x32xf32> to vector<8xf32>
    %125 = vector.shape_cast %124 : vector<8xf32> to vector<8x1xf32>
    %cst_54 = arith.constant 3.200000e+01 : f32
    %126 = vector.broadcast %cst_54 : f32 to vector<8x1xf32>
    %127 = arith.divf %125, %126 : vector<8x1xf32>
    %128 = vector.broadcast %127 : vector<8x1xf32> to vector<8x32xf32>
    %129 = arith.subf %121, %128 : vector<8x32xf32>
    %130 = arith.mulf %129, %129 : vector<8x32xf32>
    %cst_55 = arith.constant dense<0.000000e+00> : vector<8xf32>
    %131 = vector.multi_reduction <add>, %130, %cst_55 [1] : vector<8x32xf32> to vector<8xf32>
    %132 = vector.shape_cast %131 : vector<8xf32> to vector<8x1xf32>
    %cst_56 = arith.constant 3.200000e+01 : f32
    %133 = vector.broadcast %cst_56 : f32 to vector<8x1xf32>
    %134 = arith.divf %132, %133 : vector<8x1xf32>
    %135 = vector.broadcast %127 : vector<8x1xf32> to vector<8x32xf32>
    %136 = arith.subf %121, %135 : vector<8x32xf32>
    %cst_57 = arith.constant 9.99999996E-13 : f32
    %137 = vector.broadcast %cst_57 : f32 to vector<8x1xf32>
    %138 = arith.addf %134, %137 : vector<8x1xf32>
    %139 = math.rsqrt %138 : vector<8x1xf32>
    %140 = vector.broadcast %139 : vector<8x1xf32> to vector<8x32xf32>
    %141 = arith.mulf %136, %140 : vector<8x32xf32>
    %142 = vector.broadcast %122 : vector<1x32xf32> to vector<8x32xf32>
    %143 = arith.mulf %141, %142 : vector<8x32xf32>
    %144 = vector.broadcast %123 : vector<1x32xf32> to vector<8x32xf32>
    %145 = arith.addf %143, %144 : vector<8x32xf32>
    %146 = arith.truncf %145 : vector<8x32xf32> to vector<8x32xbf16>
    %c0_58 = arith.constant 0 : index
    %c0_59 = arith.constant 0 : index
    %147 = vector.load %arg12[%c0_58, %c0_59] : memref<1x32xf32, #tpu.memory_space<vmem>>, vector<1x32xf32>
    %148 = vector.shape_cast %147 : vector<1x32xf32> to vector<1x32xf32>
    %149 = vector.broadcast %148 : vector<1x32xf32> to vector<8x32xf32>
    %c0_60 = arith.constant 0 : index
    %c0_61 = arith.constant 0 : index
    %150 = vector.load %arg18[%c0_60, %c0_61] : memref<8x32xf32, #tpu.memory_space<vmem>>, vector<8x32xf32>
    tpu.vector_store %arg18[%c0_60, %c0_61], %149 {strides = array<i32>} : memref<8x32xf32, #tpu.memory_space<vmem>>, vector<8x32xf32>,
    %c0_i32_62 = arith.constant 0 : i32
    %151 = arith.index_cast %c0_i32_62 : i32 to index
    %c0_63 = arith.constant 0 : index
    %c0_64 = arith.constant 0 : index
    %152 = vector.load %arg9[%151, %c0_63, %c0_64] : memref<1x32x64xbf16, #tpu.memory_space<vmem>>, vector<1x32x64xbf16>
    %153 = vector.shape_cast %152 : vector<1x32x64xbf16> to vector<32x64xbf16>
    %cst_65 = arith.constant dense<0.000000e+00> : vector<8x64xf32>
    %154 = tpu.matmul %146, %153, %cst_65 {dimension_numbers = #tpu.dot_dimension_numbers<[1], [0], [0], [1], [0, 0, 1, 1], [], []>} : vector<8x32xbf16>, vector<32x64xbf16>, vector<8x64xf32> -> vector<8x64xf32>
    %155 = arith.index_cast %c0_i32_62 : i32 to index
    %c0_66 = arith.constant 0 : index
    %c0_67 = arith.constant 0 : index
    %156 = vector.load %arg10[%155, %c0_66, %c0_67] : memref<1x1x64xf32, #tpu.memory_space<vmem>>, vector<1x1x64xf32>
    %157 = vector.shape_cast %156 : vector<1x1x64xf32> to vector<1x64xf32>
    %158 = vector.broadcast %157 : vector<1x64xf32> to vector<8x64xf32>
    %159 = arith.addf %154, %158 : vector<8x64xf32>
    %cst_68 = arith.constant 5.000000e-01 : f32
    %160 = vector.broadcast %cst_68 : f32 to vector<8x64xf32>
    %161 = arith.mulf %160, %159 : vector<8x64xf32>
    %cst_69 = arith.constant 0.707106769 : f32
    %162 = vector.broadcast %cst_69 : f32 to vector<8x64xf32>
    %163 = arith.mulf %159, %162 : vector<8x64xf32>
    %cst_70 = arith.constant 0.000000e+00 : f32
    %164 = vector.broadcast %cst_70 : f32 to vector<8x64xf32>
    %165 = arith.cmpf olt, %163, %164 : vector<8x64xf32>
    %cst_71 = arith.constant 0.000000e+00 : f32
    %166 = vector.broadcast %cst_71 : f32 to vector<8x64xf32>
    %167 = arith.subf %166, %163 : vector<8x64xf32>
    %168 = arith.select %165, %167, %163 : vector<8x64xi1>, vector<8x64xf32>
    %cst_72 = arith.constant 0.327591091 : f32
    %169 = vector.broadcast %cst_72 : f32 to vector<8x64xf32>
    %170 = arith.mulf %169, %168 : vector<8x64xf32>
    %cst_73 = arith.constant 1.000000e+00 : f32
    %171 = vector.broadcast %cst_73 : f32 to vector<8x64xf32>
    %172 = arith.addf %171, %170 : vector<8x64xf32>
    %cst_74 = arith.constant 1.000000e+00 : f32
    %173 = vector.broadcast %cst_74 : f32 to vector<8x64xf32>
    %174 = arith.divf %173, %172 : vector<8x64xf32>
    %cst_75 = arith.constant 1.06140542 : f32
    %175 = vector.broadcast %cst_75 : f32 to vector<8x64xf32>
    %176 = arith.mulf %175, %174 : vector<8x64xf32>
    %cst_76 = arith.constant -1.45315206 : f32
    %177 = vector.broadcast %cst_76 : f32 to vector<8x64xf32>
    %178 = arith.addf %176, %177 : vector<8x64xf32>
    %179 = arith.mulf %178, %174 : vector<8x64xf32>
    %cst_77 = arith.constant 1.42141378 : f32
    %180 = vector.broadcast %cst_77 : f32 to vector<8x64xf32>
    %181 = arith.addf %179, %180 : vector<8x64xf32>
    %182 = arith.mulf %181, %174 : vector<8x64xf32>
    %cst_78 = arith.constant -0.284496725 : f32
    %183 = vector.broadcast %cst_78 : f32 to vector<8x64xf32>
    %184 = arith.addf %182, %183 : vector<8x64xf32>
    %185 = arith.mulf %184, %174 : vector<8x64xf32>
    %cst_79 = arith.constant 0.254829586 : f32
    %186 = vector.broadcast %cst_79 : f32 to vector<8x64xf32>
    %187 = arith.addf %185, %186 : vector<8x64xf32>
    %188 = arith.mulf %187, %174 : vector<8x64xf32>
    %cst_80 = arith.constant 0.000000e+00 : f32
    %189 = vector.broadcast %cst_80 : f32 to vector<8x64xf32>
    %190 = arith.subf %189, %168 : vector<8x64xf32>
    %191 = arith.mulf %190, %168 : vector<8x64xf32>
    %192 = math.exp %191 : vector<8x64xf32>
    %193 = arith.mulf %188, %192 : vector<8x64xf32>
    %cst_81 = arith.constant 1.000000e+00 : f32
    %194 = vector.broadcast %cst_81 : f32 to vector<8x64xf32>
    %195 = arith.subf %194, %193 : vector<8x64xf32>
    %cst_82 = arith.constant 0.000000e+00 : f32
    %196 = vector.broadcast %cst_82 : f32 to vector<8x64xf32>
    %197 = arith.subf %196, %195 : vector<8x64xf32>
    %198 = arith.select %165, %197, %195 : vector<8x64xi1>, vector<8x64xf32>
    %cst_83 = arith.constant 1.000000e+00 : f32
    %199 = vector.broadcast %cst_83 : f32 to vector<8x64xf32>
    %200 = arith.addf %199, %198 : vector<8x64xf32>
    %201 = arith.mulf %161, %200 : vector<8x64xf32>
    %202 = arith.truncf %201 : vector<8x64xf32> to vector<8x64xbf16>
    %c0_84 = arith.constant 0 : index
    %c0_85 = arith.constant 0 : index
    %203 = vector.load %arg18[%c0_84, %c0_85] : memref<8x32xf32, #tpu.memory_space<vmem>>, vector<8x32xf32>
    %204 = arith.index_cast %c0_i32_62 : i32 to index
    %c0_86 = arith.constant 0 : index
    %c0_87 = arith.constant 0 : index
    %205 = vector.load %arg11[%204, %c0_86, %c0_87] : memref<1x64x32xbf16, #tpu.memory_space<vmem>>, vector<1x64x32xbf16>
    %206 = vector.shape_cast %205 : vector<1x64x32xbf16> to vector<64x32xbf16>
    %cst_88 = arith.constant dense<0.000000e+00> : vector<8x32xf32>
    %207 = tpu.matmul %202, %206, %cst_88 {dimension_numbers = #tpu.dot_dimension_numbers<[1], [0], [0], [1], [0, 0, 1, 1], [], []>} : vector<8x64xbf16>, vector<64x32xbf16>, vector<8x32xf32> -> vector<8x32xf32>
    %208 = arith.addf %203, %207 : vector<8x32xf32>
    %c0_89 = arith.constant 0 : index
    %c0_90 = arith.constant 0 : index
    %209 = vector.load %arg18[%c0_89, %c0_90] : memref<8x32xf32, #tpu.memory_space<vmem>>, vector<8x32xf32>
    tpu.vector_store %arg18[%c0_89, %c0_90], %208 {strides = array<i32>} : memref<8x32xf32, #tpu.memory_space<vmem>>, vector<8x32xf32>,
    %c1_i32_91 = arith.constant 1 : i32
    %c0_92 = arith.constant 0 : index
    %c0_93 = arith.constant 0 : index
    %210 = vector.load %arg18[%c0_92, %c0_93] : memref<8x32xf32, #tpu.memory_space<vmem>>, vector<8x32xf32>
    %211 = arith.addf %210, %145 : vector<8x32xf32>
    %c0_94 = arith.constant 0 : index
    %c0_95 = arith.constant 0 : index
    %212 = vector.load %arg13[%c0_94, %c0_95] : memref<1x32xf32, #tpu.memory_space<vmem>>, vector<1x32xf32>
    %c0_96 = arith.constant 0 : index
    %c0_97 = arith.constant 0 : index
    %213 = vector.load %arg14[%c0_96, %c0_97] : memref<1x32xf32, #tpu.memory_space<vmem>>, vector<1x32xf32>
    %cst_98 = arith.constant dense<0.000000e+00> : vector<8xf32>
    %214 = vector.multi_reduction <add>, %211, %cst_98 [1] : vector<8x32xf32> to vector<8xf32>
    %215 = vector.shape_cast %214 : vector<8xf32> to vector<8x1xf32>
    %cst_99 = arith.constant 3.200000e+01 : f32
    %216 = vector.broadcast %cst_99 : f32 to vector<8x1xf32>
    %217 = arith.divf %215, %216 : vector<8x1xf32>
    %218 = vector.broadcast %217 : vector<8x1xf32> to vector<8x32xf32>
    %219 = arith.subf %211, %218 : vector<8x32xf32>
    %220 = arith.mulf %219, %219 : vector<8x32xf32>
    %cst_100 = arith.constant dense<0.000000e+00> : vector<8xf32>
    %221 = vector.multi_reduction <add>, %220, %cst_100 [1] : vector<8x32xf32> to vector<8xf32>
    %222 = vector.shape_cast %221 : vector<8xf32> to vector<8x1xf32>
    %cst_101 = arith.constant 3.200000e+01 : f32
    %223 = vector.broadcast %cst_101 : f32 to vector<8x1xf32>
    %224 = arith.divf %222, %223 : vector<8x1xf32>
    %225 = vector.broadcast %217 : vector<8x1xf32> to vector<8x32xf32>
    %226 = arith.subf %211, %225 : vector<8x32xf32>
    %cst_102 = arith.constant 9.99999996E-13 : f32
    %227 = vector.broadcast %cst_102 : f32 to vector<8x1xf32>
    %228 = arith.addf %224, %227 : vector<8x1xf32>
    %229 = math.rsqrt %228 : vector<8x1xf32>
    %230 = vector.broadcast %229 : vector<8x1xf32> to vector<8x32xf32>
    %231 = arith.mulf %226, %230 : vector<8x32xf32>
    %232 = vector.broadcast %212 : vector<1x32xf32> to vector<8x32xf32>
    %233 = arith.mulf %231, %232 : vector<8x32xf32>
    %234 = vector.broadcast %213 : vector<1x32xf32> to vector<8x32xf32>
    %235 = arith.addf %233, %234 : vector<8x32xf32>
    %236 = arith.truncf %235 : vector<8x32xf32> to vector<8x32xbf16>
    %c0_103 = arith.constant 0 : index
    %c0_104 = arith.constant 0 : index
    %c0_105 = arith.constant 0 : index
    %237 = vector.load %arg15[%c0_103, %c0_104, %c0_105] : memref<1x8x32xbf16, #tpu.memory_space<vmem>>, vector<1x8x32xbf16>
    %238 = vector.shape_cast %237 : vector<1x8x32xbf16> to vector<8x32xbf16>
    %239 = vector.shape_cast %236 : vector<8x32xbf16> to vector<1x8x32xbf16>
    tpu.vector_store %arg15[%c0_103, %c0_104, %c0_105], %239 {strides = array<i32>} : memref<1x8x32xbf16, #tpu.memory_space<vmem>>, vector<1x8x32xbf16>,
    return
  }
  func.func @transform_0(%arg0: i32) -> (i32, i32, i32) {
    %c0_i32 = arith.constant 0 : i32
    %c0_i32_0 = arith.constant 0 : i32
    %c0_i32_1 = arith.constant 0 : i32
    return %arg0, %c0_i32, %c0_i32_0 : i32, i32, i32
  }
  func.func @transform_1(%arg0: i32) -> (i32, i32, i32) {
    %c0_i32 = arith.constant 0 : i32
    %c0_i32_0 = arith.constant 0 : i32
    %c0_i32_1 = arith.constant 0 : i32
    return %arg0, %c0_i32, %c0_i32_0 : i32, i32, i32
  }
  func.func @transform_2(%arg0: i32) -> (i32, i32) {
    %c0_i32 = arith.constant 0 : i32
    %c0_i32_0 = arith.constant 0 : i32
    %c0_i32_1 = arith.constant 0 : i32
    return %c0_i32, %c0_i32_0 : i32, i32
  }
  func.func @transform_3(%arg0: i32) -> (i32, i32) {
    %c0_i32 = arith.constant 0 : i32
    %c0_i32_0 = arith.constant 0 : i32
    %c0_i32_1 = arith.constant 0 : i32
    return %c0_i32, %c0_i32_0 : i32, i32
  }
  func.func @transform_4(%arg0: i32) -> (i32, i32) {
    %c0_i32 = arith.constant 0 : i32
    %c0_i32_0 = arith.constant 0 : i32
    %c0_i32_1 = arith.constant 0 : i32
    return %c0_i32, %c0_i32_0 : i32, i32
  }
  func.func @transform_5(%arg0: i32) -> (i32, i32) {
    %c0_i32 = arith.constant 0 : i32
    %c0_i32_0 = arith.constant 0 : i32
    %c0_i32_1 = arith.constant 0 : i32
    return %c0_i32, %c0_i32_0 : i32, i32
  }
  func.func @transform_6(%arg0: i32) -> (i32, i32) {
    %c0_i32 = arith.constant 0 : i32
    %c0_i32_0 = arith.constant 0 : i32
    %c0_i32_1 = arith.constant 0 : i32
    return %c0_i32, %c0_i32_0 : i32, i32
  }
  func.func @transform_7(%arg0: i32) -> (i32, i32) {
    %c0_i32 = arith.constant 0 : i32
    %c0_i32_0 = arith.constant 0 : i32
    %c0_i32_1 = arith.constant 0 : i32
    return %c0_i32, %c0_i32_0 : i32, i32
  }
  func.func @transform_8(%arg0: i32) -> (i32, i32, i32) {
    %c0_i32 = arith.constant 0 : i32
    %c0_i32_0 = arith.constant 0 : i32
    %c0_i32_1 = arith.constant 0 : i32
    %c0_i32_2 = arith.constant 0 : i32
    return %c0_i32, %c0_i32_0, %c0_i32_1 : i32, i32, i32
  }
  func.func @transform_9(%arg0: i32) -> (i32, i32, i32) {
    %c0_i32 = arith.constant 0 : i32
    %c0_i32_0 = arith.constant 0 : i32
    %c0_i32_1 = arith.constant 0 : i32
    %c0_i32_2 = arith.constant 0 : i32
    return %c0_i32, %c0_i32_0, %c0_i32_1 : i32, i32, i32
  }
  func.func @transform_10(%arg0: i32) -> (i32, i32, i32) {
    %c0_i32 = arith.constant 0 : i32
    %c0_i32_0 = arith.constant 0 : i32
    %c0_i32_1 = arith.constant 0 : i32
    %c0_i32_2 = arith.constant 0 : i32
    return %c0_i32, %c0_i32_0, %c0_i32_1 : i32, i32, i32
  }
  func.func @transform_11(%arg0: i32) -> (i32, i32) {
    %c0_i32 = arith.constant 0 : i32
    %c0_i32_0 = arith.constant 0 : i32
    %c0_i32_1 = arith.constant 0 : i32
    return %c0_i32, %c0_i32_0 : i32, i32
  }
  func.func @transform_12(%arg0: i32) -> (i32, i32) {
    %c0_i32 = arith.constant 0 : i32
    %c0_i32_0 = arith.constant 0 : i32
    %c0_i32_1 = arith.constant 0 : i32
    return %c0_i32, %c0_i32_0 : i32, i32
  }
  func.func @transform_13(%arg0: i32) -> (i32, i32) {
    %c0_i32 = arith.constant 0 : i32
    %c0_i32_0 = arith.constant 0 : i32
    %c0_i32_1 = arith.constant 0 : i32
    return %c0_i32, %c0_i32_0 : i32, i32
  }
  func.func @transform_14(%arg0: i32) -> (i32, i32, i32) {
    %c0_i32 = arith.constant 0 : i32
    %c0_i32_0 = arith.constant 0 : i32
    %c0_i32_1 = arith.constant 0 : i32
    return %arg0, %c0_i32, %c0_i32_0 : i32, i32, i32
  }
}

</mosaic_0001>

<bundles_post_ra>
// kernel: tpu_custom_call.1
= control target key start
LH: loop header
LB: loop body
LE: loop exit
PB: predicated region body
PF: predicated region fallthrough
CT: control target
= control target key end

     0   :  { %s2198_s0 = inlined_call_operand.vmem [shape: f32[2,8,32], index: 0, kind: input, shape index: {}]   ;;  %s2199_s1 = inlined_call_operand.vmem [shape: f32[2,1,8], index: 1, kind: input, shape index: {}]   ;;  %s2200_s2 = inlined_call_operand.vmem [shape: bf16[32,96], index: 2, kind: input, shape index: {}]   ;;  %s2201_s3 = inlined_call_operand.vmem [shape: f32[1,96], index: 3, kind: input, shape index: {}]   ;;  %s2202_s4 = inlined_call_operand.vmem [shape: bf16[32,32], index: 4, kind: input, shape index: {}]   ;;  %s2203_s5 = inlined_call_operand.vmem [shape: f32[1,32], index: 5, kind: input, shape index: {}]   ;;  %s2204_s6 = inlined_call_operand.vmem [shape: f32[1,32], index: 6, kind: input, shape index: {}]   ;;  %s2205_s7 = inlined_call_operand.vmem [shape: f32[1,32], index: 7, kind: input, shape index: {}]   ;;  %s2206_s8 = inlined_call_operand.hbm [shape: bf16[1,32,64], index: 8, kind: input, shape index: {}]   ;;  %s2207_s9 = inlined_call_operand.vmem [shape: f32[1,1,64], index: 9, kind: input, shape index: {}]   ;;  %s2208_s10 = inlined_call_operand.vmem [shape: bf16[1,64,32], index: 10, kind: input, shape index: {}]   ;;  %s2209_s11 = inlined_call_operand.vmem [shape: f32[1,32], index: 11, kind: input, shape index: {}]   ;;  %s2210_s12 = inlined_call_operand.vmem [shape: f32[1,32], index: 12, kind: input, shape index: {}]   ;;  %s2211_s13 = inlined_call_operand.vmem [shape: f32[1,32], index: 13, kind: input, shape index: {}]   ;;  %s2212_s14 = inlined_call_operand.hbm [shape: bf16[2,8,32], index: 14, kind: output, shape index: {}]  }
   0x1   :  { %2220 = sst [smem:[#allocation15_spill]] %s2198_s0 }
   0x2   :  { %19 = vsyncpa [#allocation6], 0 }
   0x3   :  { %20 = vsyncpa [#allocation7], 0 }
   0x4   :  { %22 = vsyncpa [#allocation7 + $0x1], 0  ;;  %s1906_s29 = smov 0   ;;  %s1908_s30 = smov 0  }
   0x5   :  { %s1910_s15 = smov 0   ;;  %s1912_s16 = smov 0  }
   0x6 LB: > { %2221 = sst [smem:[#allocation11_spill]] %s1811_s15  ;;  %s1927_s17 = sadd.s32 4294967295, %s1815_s16   ;;  %s1815_s16 = sphi %s1912_s16, %s2236_s16   ;;  %s1811_s15 = sphi %s1910_s15, %s2238_s15   ;;  %s1807_s30 = sphi %s1908_s30, %s2240_s30   ;;  %s1803_s29 = sphi %s1906_s29, %s2239_s29  }
   0x7   : > { %s1460_s18 = sadd.s32 4294967294, %s1815_s16   ;;  %s1931_s19 = sadd.s32 1, %s1815_s16  }
   0x8   : > { %2222 = sst [smem:[#allocation12_spill]] %s1931_s19  ;;  %s339_s20 = sadd.s32 1, %s1811_s15 }
   0x9   : > { %s336_s21 = ssub.s32 %s1815_s16, %s1931_s19  ;;  %p349_p0 = scmp.ne.s32.totalorder %s1811_s15, %s1807_s30 }
   0xa   : > { %p337_p1 = scmp.eq.s32.totalorder %s336_s21, 0  ;;  %p350_p2 = scmp.eq.s32.totalorder %s1927_s17, 1 }
   0xb   : > { %p355_p3 = scmp.ne.s32.totalorder %s1807_s30, %s1803_s29  ;;  %p356_p4 = scmp.eq.s32.totalorder %s1460_s18, 1 }
   0xc   : > { %s1942_s22 = scalar_select %p337_p1, %s1811_s15, %s339_s20  }
   0xd   : > { %p1944_p5 = por %p350_p2, %p349_p0  ;;  %p1948_p6 = por %p356_p4, %p355_p3 }
   0xe   : > { %2223 = sst [smem:[#allocation13_spill]] %s1942_s22  ;;  %p1461_p7 = scmp.ge.s32.totalorder %s1815_s16, 1 }
   0xf   : > { %s2224_s23 = scalar_select %p1944_p5, 1, 0 }
  0x10   : > { %s2225_s24 = scalar_select %p1948_p6, 1, 0 }
  0x11   : > { %p363_p8 = scmp.lt.s32.totalorder %s1815_s16, 3  ;;  %p2217_p9 = scmp.eq.s32.totalorder %s1927_s17, 0 }
  0x12   : > { %2226 = sst [smem:[#allocation14_spill]] %s2225_s24  ;;  %s1817_s26 = smov [#allocation5]  }
  0x13   : > { %p1955_p10 = pnand %p1461_p7, %p363_p8  ;;  %s393_s27 = sshll.u32 %s1817_s26, 4  ;;  %s394_s27 = int_to_ptr.vmem [resolvable:$true] %s393_s27 }
  0x14   : > { %s1721_s21 = scalar_lea.hbm %s2206_s8, 256 }
  0x15   : > { %s2227_s25 = scalar_select %p1955_p10, 1, 0 }
  0x16   : > { %p1628_p11 = pneg %p1955_p10  ;;  %p1722_p13 = scmp.ne.s32.totalorder %s2206_s8, %s1721_s21 }
  0x17   : > { %p1728_p3 = scmp.lt.u32.totalorder %s1721_s21, %s2206_s8 }
  0x18   : > { %p1963_p12 = pnand %p2217_p9, %p1628_p11 }
  0x1a   : > { %p1723_p0 = pneg %p1963_p12 }
  0x1c   : > { %p1724_p1 = pnand %p1723_p0, %p1722_p13 }
  0x1e   : > { %p1725_p2 = pneg %p1724_p1 }
  0x20   : > { %p1730_p4 = pnand %p1728_p3, %p1725_p2 }
  0x22   : > { %1733 = shalt.err (!%p1730_p4)
}
  0x23   : > { %s1734_s24 = scalar_lea.vmem %s394_s27, 256  ;;  %p1742_p9 = scmp.lt.s32.totalorder %s394_s27, %s394_s27 }
  0x24   : > { %p1735_p7 = scmp.ne.s32.totalorder %s394_s27, %s1734_s24  ;;  %p1743_p6 = scmp.lt.s32.totalorder %s1734_s24, %s1734_s24 }
  0x26   : > { %p1737_p8 = pnand %p1735_p7, %p1723_p0  ;;  %p1744_p5 = por %p1743_p6, %p1742_p9 }
  0x28   : > { %p1738_p11 = pneg %p1737_p8 }
  0x2a   : > { %p1745_p10 = pnand %p1744_p5, %p1738_p11 }
  0x2c   : > { %1748 = shalt.err (!%p1745_p10)
}
  0x2d   : > { %s1818_s15 = smov 64   ;;  %s1819_s22 = smov 4  }
  0x2e   : > { %1631 = dma.hbm_to_vmem [thread:$0]  (!%p1963_p12), %s2206_s8, 256, %s394_s27, [#allocation6], %s1818_s15, %s1818_s15, %s1819_s22  }
  0x2f   : > { %p2229_p13 = scmp.ne.s32.totalorder %s2227_s25, 0 }
  0x30   : > { %p2230_p1 = scmp.eq.s32.totalorder (!%p2229_p13), %s1927_s17, 0 }
  0x31   : > { %437 = sbr.rel (%p2229_p13) target bundleno = 2773 (0xad5), region = 76 }
  0x38   : > { %1794 = dma.done.wait (%p2230_p1), [#allocation6], 256   ;;  %p2231_p0 = pmov %p2230_p1 }
  0x39   : > { %p485_p5 = scmp.lt.s32.totalorder %s1927_s17, 1  ;;  %v1820_v0 = vmov 0.0   ;;  %vm1821_vm0 = vmmov 0   ;;  %s2232_s0 = sld [smem:[#allocation15_spill]]  ;;  %v1684_v1 = vld [vmem:[%s2200_s2] sm:$0xff]   ;;  %v1685_v2 = vld [vmem:[%s2200_s2 + $0x8] sm:$0xff]  }
  0x3a   : > { %1796 = vsyncadd (%p2231_p0), [#allocation6], 4294967040  ;;  %1538 = vmatprep.subr.bf16.mxu0 %v1820_v0  ;;  %1542 = vmatprep.mubr.msk.bf16.mxu0 %vm1821_vm0, %v1820_v0  ;;  %vm519_vm1 = vcmask 261120   ;;  %v1468_v5 = vld [vmem:[%s2201_s3] ss:$0 sm:$0xff]  ;;  %vm564_vm2 = vcmask 257024  }
  0x3b   : > { %s1994_s19 = scalar_select %p485_p5, %s1927_s17, 1  ;;  %1546 = vmatprep.subr.bf16.mxu1 %v1820_v0  ;;  %1548 = vmatprep.mubr.msk.bf16.mxu1 %vm1821_vm0, %v1820_v0  ;;  %vm588_vm3 = vcmask 64512   ;;  %vm650_vm4 = vcmask 1043456   ;;  %vm1046_vm5 = vcmask 130048   ;;  %vm1048_vm6 = vcmask 195584  }
  0x3c   : > { %1539 = vmatpush3.bf16.msra.mxu0 %v1684_v1  ;;  %s1823_s25 = smov 120   ;;  %s1824_s27 = smov 112   ;;  %vm1287_vm8 = vcmask 523264  }
  0x3d   : > { %s1467_s24 = sshll.u32 %s1994_s19, 3  ;;  %1540 = vmatprep.subr.bf16.mxu0 %v1820_v0  ;;  %s491_s15 = scalar_lea.vmem %s2199_s1, %s1994_s19 }
  0x3e   : > { %v1473_v27 = vld [vmem:[%s491_s15] ss:$0 sm:$0xff]  ;;  %s1826_s19 = smov 64   ;;  %s1827_s22 = smov 8  }
  0x3f   : > { %s488_s28 = scalar_lea.vmem %s2232_s0, %s1467_s24  ;;  %s1822_s24 = smov 96  }
  0x40   : > { %v2009_v3 = vld [vmem:[%s488_s28] sm:$0xff]  ;;  %1541 = vmatpush3.bf16.msra.mxu0 %v1685_v2  ;;  %s1825_s28 = smov 104   ;;  %s1504_s15 = sshll.u32 %s1927_s17, 6 }
  0x41   : > { %v495_v4 = vpack.c.bf16 %v2009_v3, %v2009_v3  ;;  %1552 = vmatprep.subr.bf16.mxu0 %v1820_v0  ;;  %s2155_s0 = scalar_lea.hbm %s2212_s14, %s1504_s15  ;;  %p2233_p9 = scmp.ne.s32.totalorder %s2224_s23, 0 }
  0x42   : > { %s1830_s17 = smov [#allocation8]  }
  0x43   : > { %1543 = vmatmul.mubr.msk.bf16.vlgmr.msra.gmra.mrb[0].mxu0 %vm519_vm1, %v495_v4 }
  0x44   : > { %1554 = vmatprep.mubr.msk.bf16.mxu0 %vm1821_vm0, %v1820_v0 }
 0x116   : > { %v557_v6 = vpop.f32.mrb[0].mxu0 }
 0x117   : > { %v558_v7 = vadd.f32 %v1468_v5, %v557_v6  ;;  %v1544_v8 = vpop.f32.mrb[1].mxu0 }
 0x118   : > { %v560_v9 = vpop.f32.mrb[2].mxu0 }
 0x119   : > { %v2021_v10 = vpack.c.bf16 %v558_v7, %v558_v7  ;;  %v1545_v11 = vpop.f32.mrb[3].mxu0 }
 0x11b   : > { %565 = vst.msk [vmem:[#allocation2] sm:$0xf] %vm564_vm2, %v2021_v10  ;;  %569 = vrot.lane.b32.xlu0 %v2021_v10, %s1822_s24  ;;  %s1828_s24 = smov 16  }
 0x122   : > { %v579_v12 = vld [vmem:[#allocation2] sm:$0xf] }
 0x123   : > { %v1476_v13 = vcombine.low %v579_v12, %v579_v12 }
 0x125   : > { %697 = vrot.lane.b32.xlu1 %v1476_v13, %s1823_s25 }
 0x18d   : > { %v570_v14 = vpop.permute.xlu0 %569 }
 0x18e   : > { %573 = vst.msk [vmem:[#allocation2 + $0x4] sm:$0xf] %vm564_vm2, %v570_v14 }
 0x195   : > { %v580_v15 = vld [vmem:[#allocation2 + $0x4] sm:$0xf] }
 0x196   : > { %v593_v16 = vsel %vm588_vm3, %v580_v15, 0  ;;  %v1477_v17 = vcombine.low %v580_v15, %v580_v15 }
 0x197   : > { %1547 = vmatpush3.bf16.xpose.msra.mxu1 %v593_v16  ;;  %v698_v20 = vpop.permute.xlu1 %697 }
 0x198   : > { %702 = vrot.lane.b32.xlu0 %v1477_v17, %s1823_s25  ;;  %815 = vrot.lane.b32.xlu1 %v1477_v17, %s1824_s27 }
 0x199   : > { %1558 = vmatprep.subr.bf16.mxu1 %v1820_v0 }
 0x19c   : > { %813 = vrot.lane.b32.xlu0 %v1476_v13, %s1824_s27  ;;  %925 = vrot.lane.b32.xlu1 %v1477_v17, %s1825_s28 }
 0x19e   : > { %1549 = vmatmul.mubr.msk.bf16.vlgmr.msra.gmra.mrb[0].mxu1 %vm588_vm3, %v579_v12 }
 0x19f   : > { %1560 = vmatprep.mubr.msk.bf16.mxu1 %vm1821_vm0, %v1820_v0 }
 0x1a0   : > { %923 = vrot.lane.b32.xlu0 %v1476_v13, %s1825_s28 }
 0x20a   : > { %v703_v18 = vpop.permute.xlu0 %702  ;;  %v816_v21 = vpop.permute.xlu1 %815 }
 0x20b   : > { %v708_v19 = vsel %vm588_vm3, %v703_v18, 0  ;;  %v821_v22 = vsel %vm588_vm3, %v816_v21, 0 }
 0x20c   : > { %1559 = vmatpush3.bf16.xpose.msra.mxu1 %v708_v19 }
 0x20d   : > { %1570 = vmatprep.subr.bf16.mxu1 %v1820_v0 }
 0x20e   : > { %v926_v23 = vpop.permute.xlu1 %925  ;;  %v814_v24 = vpop.permute.xlu0 %813 }
 0x20f   : > { %v931_v25 = vsel %vm588_vm3, %v926_v23, 0 }
 0x212   : > { %v924_v26 = vpop.permute.xlu0 %923 }
 0x213   : > { %1561 = vmatmul.mubr.msk.bf16.vlgmr.msra.gmra.mrb[4].mxu1 %vm588_vm3, %v698_v20 }
 0x214   : > { %1571 = vmatpush3.bf16.xpose.msra.mxu1 %v821_v22  ;;  %1572 = vmatprep.mubr.msk.bf16.mxu1 %vm1821_vm0, %v1820_v0 }
 0x215   : > { %1582 = vmatprep.subr.bf16.mxu1 %v1820_v0 }
 0x21b   : > { %1573 = vmatmul.mubr.msk.bf16.vlgmr.msra.gmra.mrb[8].mxu1 %vm588_vm3, %v814_v24 }
 0x21c   : > { %1583 = vmatpush3.bf16.xpose.msra.mxu1 %v931_v25  ;;  %1584 = vmatprep.mubr.msk.bf16.mxu1 %vm1821_vm0, %v1820_v0 }
 0x21d   : > { %1594 = vmatprep.subr.bf16.mxu1 %v1820_v0 }
 0x223   : > { %1585 = vmatmul.mubr.msk.bf16.vlgmr.msra.gmra.mrb[12].mxu1 %vm588_vm3, %v924_v26 }
 0x224   : > { %1598 = vmatprep.mubr.msk.bf16.mxu1 %vm1821_vm0, %v1820_v0 }
 0x271   : > { %v629_v28 = vpop.f32.mrb[0].mxu1 }
 0x272   : > { %v630_v29 = vadd.f32 %v1473_v27, %v629_v28  ;;  %v1550_v30 = vpop.f32.mrb[1].mxu1 }
 0x273   : > { %v632_v31 = vpop.f32.mrb[2].mxu1 }
 0x274   : > { %v1551_v32 = vpop.f32.mrb[3].mxu1  ;;  %v635_v33 = vsel %vm588_vm3, %v630_v29, -inf }
 0x275   : > { %636 = vmax.xlane.f32.xlu1 %v635_v33 }
 0x2e6   : > { %v744_v34 = vpop.f32.mrb[4].mxu1 }
 0x2e7   : > { %v745_v35 = vadd.f32 %v1473_v27, %v744_v34  ;;  %v1562_v36 = vpop.f32.mrb[5].mxu1 }
 0x2e8   : > { %v747_v37 = vpop.f32.mrb[6].mxu1 }
 0x2e9   : > { %v1563_v38 = vpop.f32.mrb[7].mxu1  ;;  %v750_v39 = vsel %vm588_vm3, %v745_v35, -inf }
 0x2ea   : > { %751 = vmax.xlane.f32.xlu0 %v750_v39 }
 0x2ee   : > { %v857_v40 = vpop.f32.mrb[8].mxu1 }
 0x2ef   : > { %v858_v41 = vadd.f32 %v1473_v27, %v857_v40  ;;  %v1574_v42 = vpop.f32.mrb[9].mxu1 }
 0x2f0   : > { %v860_v43 = vpop.f32.mrb[10].mxu1 }
 0x2f1   : > { %v1575_v44 = vpop.f32.mrb[11].mxu1  ;;  %v863_v45 = vsel %vm588_vm3, %v858_v41, -inf }
 0x2f2   : > { %864 = vmax.xlane.f32.xlu0 %v863_v45  ;;  %v1689_v44 = vld [vmem:[%s2202_s4] sm:$0xff]  }
 0x2f3   : > { %1595 = vmatpush3.bf16.msra.mxu1 %v1689_v44 }
 0x2f4   : > { %1596 = vmatprep.subr.bf16.mxu1 %v1820_v0 }
 0x2f6   : > { %v967_v46 = vpop.f32.mrb[12].mxu1 }
 0x2f7   : > { %v968_v47 = vadd.f32 %v1473_v27, %v967_v46  ;;  %v1586_v48 = vpop.f32.mrb[13].mxu1 }
 0x2f8   : > { %v970_v49 = vpop.f32.mrb[14].mxu1 }
 0x2f9   : > { %v1587_v50 = vpop.f32.mrb[15].mxu1  ;;  %v973_v51 = vsel %vm588_vm3, %v968_v47, -inf }
 0x2fa   : > { %974 = vmax.xlane.f32.xlu1 %v973_v51 }
 0x302   : > { %v637_v52 = vpop.xlane.xlu1 %636 }
 0x303   : > { %v638_v53 = vsub.f32 %v630_v29, %v637_v52 }
 0x305   : > { %v639_v54 = vmul.f32 1.442695, %v638_v53 }
 0x307   : > { %1697 = vpow2.f32 %v639_v54 }
 0x308   : > { %574 = vrot.lane.b32.xlu0 %v2021_v10, %s1826_s19 }
 0x311   : > { %v1698_v55 = vpop.eup %1697 }
 0x312   : > { %v641_v56 = vsel %vm588_vm3, %v1698_v55, 0.0 }
 0x313   : > { %642 = vadd.xlane.f32.xlu1 %v641_v56 }
 0x377   : > { %v752_v57 = vpop.xlane.xlu0 %751 }
 0x378   : > { %v753_v58 = vsub.f32 %v745_v35, %v752_v57 }
 0x37a   : > { %v754_v59 = vmul.f32 1.442695, %v753_v58 }
 0x37c   : > { %1699 = vpow2.f32 %v754_v59 }
 0x37f   : > { %v865_v60 = vpop.xlane.xlu0 %864 }
 0x380   : > { %v866_v61 = vsub.f32 %v858_v41, %v865_v60 }
 0x382   : > { %v867_v62 = vmul.f32 1.442695, %v866_v61 }
 0x383   : > { %v575_v63 = vpop.permute.xlu0 %574 }
 0x384   : > { %1701 = vpow2.f32 %v867_v62  ;;  %578 = vst.msk [vmem:[#allocation2 + $0x8] sm:$0xf] %vm564_vm2, %v575_v63  ;;  %v1485_v62 = vld [vmem:[%s2203_s5] ss:$0 sm:$0xff] }
 0x386   : > { %v1700_v1 = vpop.eup %1699 }
 0x387   : > { %v975_v2 = vpop.xlane.xlu1 %974  ;;  %v756_v4 = vsel %vm588_vm3, %v1700_v1, 0.0 }
 0x388   : > { %v976_v5 = vsub.f32 %v968_v47, %v975_v2  ;;  %757 = vadd.xlane.f32.xlu1 %v756_v4  ;;  %v1690_v47 = vld [vmem:[%s2202_s4 + $0x8] sm:$0xff]  }
 0x389   : > { %1597 = vmatpush3.bf16.msra.mxu1 %v1690_v47 }
 0x38a   : > { %v977_v6 = vmul.f32 1.442695, %v976_v5  ;;  %1610 = vmatprep.subr.bf16.mxu1 %v1820_v0 }
 0x38b   : > { %v581_v7 = vld [vmem:[#allocation2 + $0x8] sm:$0xf] }
 0x38c   : > { %1703 = vpow2.f32 %v977_v6  ;;  %v652_v8 = vsel %vm650_vm4, %v581_v7, 0  ;;  %v1479_v9 = vcombine.low %v581_v7, %v581_v7 }
 0x38d   : > { %1553 = vmatpush3.bf16.msra.mxu0 %v652_v8 }
 0x38e   : > { %v1702_v10 = vpop.eup %1701  ;;  %875 = vrot.lane.b32.xlu0 %v1479_v9, %s1824_s27  ;;  %1564 = vmatprep.subr.bf16.mxu0 %v1820_v0 }
 0x38f   : > { %v869_v11 = vsel %vm588_vm3, %v1702_v10, 0.0 }
 0x390   : > { %870 = vadd.xlane.f32.xlu1 %v869_v11 }
 0x392   : > { %985 = vrot.lane.b32.xlu0 %v1479_v9, %s1825_s28  ;;  %s1829_s28 = smov 24  }
 0x396   : > { %v1704_v12 = vpop.eup %1703 }
 0x397   : > { %v979_v13 = vsel %vm588_vm3, %v1704_v12, 0.0 }
 0x398   : > { %980 = vadd.xlane.f32.xlu1 %v979_v13  ;;  %v1691_v13 = vld [vmem:[#allocation5] sm:$0xff]  }
 0x3a0   : > { %v643_v14 = vpop.xlane.xlu1 %642 }
 0x3a1   : > { %1705 = vrcp.f32 %v643_v14  ;;  %v1692_v14 = vld [vmem:[#allocation5 + $0x8] sm:$0xff]  }
 0x3a9   : > { %765 = vrot.lane.b32.xlu1 %v1479_v9, %s1823_s25 }
 0x3ab   : > { %v1706_v15 = vpop.eup %1705 }
 0x3ac   : > { %v645_v16 = vmul.f32 %v1706_v15, %v1698_v55 }
 0x3ae   : > { %v646_v17 = vpack.c.bf16 %v645_v16, %v645_v16 }
 0x3b0   : > { %1555 = vmatmul.mubr.msk.bf16.vlgmr.msra.gmra.mrb[4].mxu0 %vm588_vm3, %v646_v17 }
 0x3b1   : > { %1566 = vmatprep.mubr.msk.bf16.mxu0 %vm1821_vm0, %v1820_v0 }
 0x400   : > { %v876_v25 = vpop.permute.xlu0 %875 }
 0x401   : > { %v881_v28 = vsel %vm650_vm4, %v876_v25, 0  ;;  %v1694_v25 = vld [vmem:[%s2208_s10 + $0x8] sm:$0xff]  }
 0x404   : > { %v986_v30 = vpop.permute.xlu0 %985 }
 0x405   : > { %v991_v33 = vsel %vm650_vm4, %v986_v30, 0 }
 0x415   : > { %v758_v18 = vpop.xlane.xlu1 %757 }
 0x416   : > { %1707 = vrcp.f32 %v758_v18  ;;  %v1489_v18 = vld [vmem:[%s2204_s6] ss:$0 sm:$0xff] }
 0x41d   : > { %v871_v19 = vpop.xlane.xlu1 %870 }
 0x41e   : > { %1709 = vrcp.f32 %v871_v19 }
 0x420   : > { %v1708_v20 = vpop.eup %1707 }
 0x421   : > { %v760_v22 = vmul.f32 %v1708_v20, %v1700_v1  ;;  %v1490_v20 = vld [vmem:[%s2205_s7] ss:$0 sm:$0xff] }
 0x423   : > { %v761_v26 = vpack.c.bf16 %v760_v22, %v760_v22 }
 0x425   : > { %v981_v21 = vpop.xlane.xlu1 %980 }
 0x426   : > { %1711 = vrcp.f32 %v981_v21 }
 0x428   : > { %v1710_v27 = vpop.eup %1709 }
 0x429   : > { %v766_v23 = vpop.permute.xlu1 %765  ;;  %v873_v29 = vmul.f32 %v1710_v27, %v1702_v10  ;;  %v1696_v27 = vld [vmem:[%s2208_s10 + $0x18] sm:$0xff]  }
 0x42a   : > { %v771_v24 = vsel %vm650_vm4, %v766_v23, 0 }
 0x42b   : > { %1565 = vmatpush3.bf16.msra.mxu0 %v771_v24  ;;  %v874_v31 = vpack.c.bf16 %v873_v29, %v873_v29  ;;  %v1693_v24 = vld [vmem:[%s2208_s10] sm:$0xff]  }
 0x42c   : > { %1576 = vmatprep.subr.bf16.mxu0 %v1820_v0  ;;  %v1492_v29 = vld [vmem:[%s2207_s9] ss:$0 sm:$0xff] }
 0x42e   : > { %1567 = vmatmul.mubr.msk.bf16.vlgmr.msra.gmra.mrb[8].mxu0 %vm588_vm3, %v761_v26  ;;  %v1695_v26 = vld [vmem:[%s2208_s10 + $0x10] sm:$0xff]  }
 0x42f   : > { %1577 = vmatpush3.bf16.msra.mxu0 %v881_v28  ;;  %1578 = vmatprep.mubr.msk.bf16.mxu0 %vm1821_vm0, %v1820_v0  ;;  %v1491_v28 = vld [vmem:[%s2209_s11] ss:$0 sm:$0xff] }
 0x430   : > { %1588 = vmatprep.subr.bf16.mxu0 %v1820_v0  ;;  %v1712_v32 = vpop.eup %1711  ;;  %1158 = vst.msk [vmem:[#allocation4] sm:$0xff] %vm519_vm1, %v1491_v28 }
 0x431   : > { %v983_v34 = vmul.f32 %v1712_v32, %v1704_v12 }
 0x433   : > { %v984_v35 = vpack.c.bf16 %v983_v34, %v983_v34 }
 0x436   : > { %1579 = vmatmul.mubr.msk.bf16.vlgmr.msra.gmra.mrb[12].mxu0 %vm588_vm3, %v874_v31 }
 0x437   : > { %1589 = vmatpush3.bf16.msra.mxu0 %v991_v33  ;;  %1590 = vmatprep.mubr.msk.bf16.mxu0 %vm1821_vm0, %v1820_v0 }
 0x438   : > { %1602 = vmatprep.subr.bf16.mxu0 %v1820_v0 }
 0x43e   : > { %1591 = vmatmul.mubr.msk.bf16.vlgmr.msra.gmra.mrb[16].mxu0 %vm588_vm3, %v984_v35 }
 0x43f   : > { %1606 = vmatprep.mubr.msk.bf16.mxu0 %vm1821_vm0, %v1820_v0  ;;  %1603 = vmatpush3.bf16.msra.mxu0 %v1691_v13 }
 0x440   : > { %1604 = vmatprep.subr.bf16.mxu0 %v1820_v0 }
 0x443   : > { %1605 = vmatpush3.bf16.msra.mxu0 %v1692_v14 }
 0x483   : > { %v688_v36 = vpop.f32.mrb[4].mxu0 }
 0x484   : > { %v1556_v37 = vpop.f32.mrb[5].mxu0 }
 0x485   : > { %v691_v38 = vpop.f32.mrb[6].mxu0 }
 0x486   : > { %v1557_v39 = vpop.f32.mrb[7].mxu0 }
 0x501   : > { %v807_v40 = vpop.f32.mrb[8].mxu0 }
 0x502   : > { %1034 = vrot.lane.b32.xlu0 %v807_v40, %s1827_s22  ;;  %v1568_v41 = vpop.f32.mrb[9].mxu0 }
 0x503   : > { %v810_v42 = vpop.f32.mrb[10].mxu0 }
 0x504   : > { %v1569_v43 = vpop.f32.mrb[11].mxu0 }
 0x509   : > { %v917_v45 = vpop.f32.mrb[12].mxu0 }
 0x50a   : > { %1038 = vrot.lane.b32.xlu0 %v917_v45, %s1828_s24  ;;  %v1580_v46 = vpop.f32.mrb[13].mxu0  ;;  %s482_s24 = sand.u32 1, %s1807_s30  }
 0x50b   : > { %v920_v48 = vpop.f32.mrb[14].mxu0  ;;  %s1466_s25 = sshll.u32 %s482_s24, 2  ;;  %s1367_s27 = scalar_lea.sflag [#allocation7], %s482_s24 }
 0x50c   : > { %v1581_v49 = vpop.f32.mrb[15].mxu0  ;;  %s484_s19 = scalar_lea.vmem [#allocation8], %s1466_s25  ;;  %s1753_s25 = sshll.u32 %s1830_s17, 4  ;;  %s1754_s25 = int_to_ptr.vmem [resolvable:$false] %s1753_s25 }
 0x50d   : > { %s1380_s22 = sshll.u32 %s484_s19, 4  ;;  %s1755_s21 = scalar_lea.vmem %s1754_s25, 128  ;;  %s2157_s22 = int_to_ptr.vmem [resolvable:$true] %s1380_s22 }
 0x50e   : > { %p1756_p2 = scmp.lt.s32.totalorder %s2157_s22, %s1754_s25 }
 0x511   : > { %v1027_v50 = vpop.f32.mrb[16].mxu0 }
 0x512   : > { %1042 = vrot.lane.b32.xlu1 %v1027_v50, %s1829_s28  ;;  %v1592_v51 = vpop.f32.mrb[17].mxu0  ;;  %s1749_s28 = scalar_lea.vmem %s2157_s22, 64 }
 0x513   : > { %v1030_v52 = vpop.f32.mrb[18].mxu0  ;;  %p1750_p6 = scmp.ne.s32.totalorder %s2157_s22, %s1749_s28  ;;  %p1757_p3 = scmp.lt.s32.totalorder %s1755_s21, %s1749_s28 }
 0x514   : > { %v1593_v53 = vpop.f32.mrb[19].mxu0 }
 0x515   : > { %p1751_p10 = pnand %p1750_p6, %p2233_p9  ;;  %p1758_p4 = por %p1757_p3, %p1756_p2 }
 0x517   : > { %p1752_p12 = pneg %p1751_p10 }
 0x519   : > { %p1759_p7 = pnand %p1758_p4, %p1752_p12 }
 0x574   : > { %v1035_v54 = vpop.permute.xlu0 %1034 }
 0x575   : > { %v1045_v56 = vsel %vm588_vm3, %v688_v36, %v1035_v54 }
 0x57c   : > { %v1039_v55 = vpop.permute.xlu0 %1038 }
 0x57d   : > { %v1047_v57 = vsel %vm1046_vm5, %v1045_v56, %v1039_v55 }
 0x584   : > { %v1043_v58 = vpop.permute.xlu1 %1042 }
 0x585   : > { %v1049_v59 = vsel %vm1048_vm6, %v1047_v57, %v1043_v58 }
 0x586   : > { %v1050_v60 = vpack.c.bf16 %v1049_v59, %v1049_v59 }
 0x588   : > { %1051 = vst.msk [vmem:[#allocation3] sm:$0xf] %vm564_vm2, %v1050_v60 }
 0x58f   : > { %v1052_v61 = vld [vmem:[#allocation3] sm:$0xf] }
 0x590   : > { %1599 = vmatmul.mubr.msk.bf16.vlgmr.msra.gmra.mrb[16].mxu1 %vm519_vm1, %v1052_v61  ;;  %v1254_v61 = vld [vmem:[#allocation4] sm:$0xff] }
 0x591   : > { %1618 = vmatprep.mubr.msk.bf16.mxu1 %vm1821_vm0, %v1820_v0  ;;  %1611 = vmatpush3.bf16.msra.mxu1 %v1693_v24 }
 0x592   : > { %1612 = vmatprep.subr.bf16.mxu1 %v1820_v0 }
 0x595   : > { %1613 = vmatpush3.bf16.msra.mxu1 %v1694_v25 }
 0x596   : > { %1614 = vmatprep.subr.bf16.mxu1 %v1820_v0 }
 0x599   : > { %1615 = vmatpush3.bf16.msra.mxu1 %v1695_v26 }
 0x59a   : > { %1616 = vmatprep.subr.bf16.mxu1 %v1820_v0 }
 0x59d   : > { %1617 = vmatpush3.bf16.msra.mxu1 %v1696_v27 }
 0x663   : > { %v1113_v63 = vpop.f32.mrb[16].mxu1 }
 0x664   : > { %v1114_v1 = vadd.f32 %v1485_v62, %v1113_v63  ;;  %v1600_v2 = vpop.f32.mrb[17].mxu1 }
 0x665   : > { %v1116_v4 = vpop.f32.mrb[18].mxu1 }
 0x666   : > { %v1601_v5 = vpop.f32.mrb[19].mxu1  ;;  %v1119_v6 = vadd.f32 %v1114_v1, %v2009_v3 }
 0x668   : > { %v1122_v7 = vsel %vm519_vm1, %v1119_v6, 0.0 }
 0x669   : > { %1123 = vadd.xlane.f32.xlu0 %v1122_v7 }
 0x6f6   : > { %v1124_v8 = vpop.xlane.xlu0 %1123 }
 0x6f7   : > { %v1126_v9 = vmul.f32 0.03125, %v1124_v8 }
 0x6f9   : > { %v1127_v10 = vsub.f32 %v1119_v6, %v1126_v9 }
 0x6fb   : > { %v1128_v11 = vmul.f32 %v1127_v10, %v1127_v10 }
 0x6fd   : > { %v1129_v12 = vsel %vm519_vm1, %v1128_v11, 0.0 }
 0x6fe   : > { %1130 = vadd.xlane.f32.xlu1 %v1129_v12 }
 0x78b   : > { %v1131_v15 = vpop.xlane.xlu1 %1130 }
 0x78c   : > { %v1132_v16 = vmul.f32 0.03125, %v1131_v15 }
 0x78e   : > { %v1133_v17 = vadd.f32 1e-12, %v1132_v16 }
 0x790   : > { %1713 = vrsqrt.f32 %v1133_v17  ;;  %v1501_v17 = vld [vmem:[%s2210_s12] ss:$0 sm:$0xff] }
 0x79a   : > { %v1714_v3 = vpop.eup %1713 }
 0x79b   : > { %v1135_v19 = vmul.f32 %v1714_v3, %v1127_v10 }
 0x79d   : > { %v1142_v21 = vmul.f32 %v1489_v18, %v1135_v19  ;;  %v1502_v18 = vld [vmem:[%s2211_s13] ss:$0 sm:$0xff] }
 0x79f   : > { %v1149_v22 = vadd.f32 %v1490_v20, %v1142_v21 }
 0x7a1   : > { %v1150_v23 = vpack.c.bf16 %v1149_v22, %v1149_v22 }
 0x7a3   : > { %1607 = vmatmul.mubr.msk.bf16.vlgmr.msra.gmra.mrb[20].mxu0 %vm519_vm1, %v1150_v23 }
 0x876   : > { %v1219_v30 = vpop.f32.mrb[20].mxu0 }
 0x877   : > { %v1220_v31 = vadd.f32 %v1492_v29, %v1219_v30  ;;  %v1608_v32 = vpop.f32.mrb[21].mxu0 }
 0x878   : > { %v1222_v33 = vpop.f32.mrb[22].mxu0 }
 0x879   : > { %v1226_v0 = vmul.f32 0.70710677, %v1220_v31  ;;  %v1609_v34 = vpop.f32.mrb[23].mxu0  ;;  %v1225_v57 = vmul.f32 0.5, %v1220_v31 }
 0x87b   : > { %vm1227_vm7 = vcmp.lt.f32.partialorder %v1226_v0, 0.0  ;;  %v1228_v35 = vsub.f32 0.0, %v1226_v0 }
 0x87d   : > { %v1229_v36 = vsel %vm1227_vm7, %v1228_v35, %v1226_v0 }
 0x87e   : > { %v1230_v37 = vmul.f32 0.3275911, %v1229_v36  ;;  %v1243_v39 = vsub.f32 0.0, %v1229_v36 }
 0x880   : > { %v1231_v38 = vadd.f32 1.0, %v1230_v37  ;;  %v1244_v41 = vmul.f32 %v1243_v39, %v1229_v36 }
 0x882   : > { %1715 = vrcp.f32 %v1231_v38  ;;  %v1245_v44 = vmul.f32 1.442695, %v1244_v41 }
 0x884   : > { %1717 = vpow2.f32 %v1245_v44 }
 0x88c   : > { %v1716_v40 = vpop.eup %1715 }
 0x88d   : > { %v1234_v42 = vmul.f32 1.0614054, %v1716_v40 }
 0x88e   : > { %v1718_v52 = vpop.eup %1717 }
 0x88f   : > { %v1235_v43 = vadd.f32 -1.4531521, %v1234_v42 }
 0x891   : > { %v1236_v45 = vmul.f32 %v1716_v40, %v1235_v43 }
 0x893   : > { %v1237_v46 = vadd.f32 1.4214138, %v1236_v45 }
 0x895   : > { %v1238_v47 = vmul.f32 %v1716_v40, %v1237_v46 }
 0x897   : > { %v1239_v48 = vadd.f32 -0.28449672, %v1238_v47 }
 0x899   : > { %v1240_v49 = vmul.f32 %v1716_v40, %v1239_v48 }
 0x89b   : > { %v1241_v50 = vadd.f32 0.2548296, %v1240_v49 }
 0x89d   : > { %v1242_v51 = vmul.f32 %v1716_v40, %v1241_v50 }
 0x89f   : > { %v1247_v53 = vmul.f32 %v1718_v52, %v1242_v51 }
 0x8a1   : > { %v1248_v54 = vsub.f32 1.0, %v1247_v53 }
 0x8a3   : > { %v1249_v55 = vsub.f32 0.0, %v1248_v54 }
 0x8a5   : > { %v1250_v56 = vsel %vm1227_vm7, %v1249_v55, %v1248_v54 }
 0x8a6   : > { %v1251_v58 = vadd.f32 1.0, %v1250_v56 }
 0x8a8   : > { %v1252_v59 = vmul.f32 %v1251_v58, %v1225_v57 }
 0x8aa   : > { %v1253_v60 = vpack.c.bf16 %v1252_v59, %v1252_v59 }
 0x8ac   : > { %1619 = vmatmul.mubr.msk.bf16.vlgmr.msra.gmra.mrb[20].mxu1 %vm1287_vm8, %v1253_v60 }
 0x97f   : > { %v1325_v62 = vpop.f32.mrb[20].mxu1 }
 0x980   : > { %v1331_v63 = vadd.f32 %v1325_v62, %v1254_v61  ;;  %v1620_v1 = vpop.f32.mrb[21].mxu1 }
 0x981   : > { %v1328_v2 = vpop.f32.mrb[22].mxu1 }
 0x982   : > { %1332 = vst.msk [vmem:[#allocation4] sm:$0xff] %vm519_vm1, %v1331_v63  ;;  %v1621_v4 = vpop.f32.mrb[23].mxu1 }
 0x989   : > { %v1333_v5 = vld [vmem:[#allocation4] sm:$0xff] }
 0x98a   : > { %v1334_v6 = vadd.f32 %v1333_v5, %v1149_v22 }
 0x98c   : > { %v1337_v7 = vsel %vm519_vm1, %v1334_v6, 0.0 }
 0x98d   : > { %1338 = vadd.xlane.f32.xlu0 %v1337_v7 }
 0xa1a   : > { %v1339_v8 = vpop.xlane.xlu0 %1338 }
 0xa1b   : > { %v1340_v9 = vmul.f32 0.03125, %v1339_v8 }
 0xa1d   : > { %v1341_v10 = vsub.f32 %v1334_v6, %v1340_v9 }
 0xa1f   : > { %v1342_v11 = vmul.f32 %v1341_v10, %v1341_v10 }
 0xa21   : > { %v1343_v12 = vsel %vm519_vm1, %v1342_v11, 0.0 }
 0xa22   : > { %1344 = vadd.xlane.f32.xlu0 %v1343_v12 }
 0xaaf   : > { %v1345_v13 = vpop.xlane.xlu0 %1344 }
 0xab0   : > { %v1346_v14 = vmul.f32 0.03125, %v1345_v13 }
 0xab2   : > { %v1347_v15 = vadd.f32 1e-12, %v1346_v14 }
 0xab4   : > { %1719 = vrsqrt.f32 %v1347_v15 }
 0xabe   : > { %v1720_v16 = vpop.eup %1719 }
 0xabf   : > { %v1349_v3 = vmul.f32 %v1720_v16, %v1341_v10 }
 0xac1   : > { %v1356_v19 = vmul.f32 %v1501_v17, %v1349_v3 }
 0xac3   : > { %v1363_v20 = vadd.f32 %v1502_v18, %v1356_v19 }
 0xac5   : > { %v1364_v21 = vpack.c.bf16 %v1363_v20, %v1363_v20 }
 0xac7   : > { %1365 = vst.msk [vmem:[%s484_s19] sm:$0xf] %vm564_vm2, %v1364_v21 }
 0xac8   : > { %1762 = shalt.err (!%p1759_p7)
}
 0xac9   : > { %s1763_s24 = scalar_lea.hbm %s2155_s0, 64  ;;  %s1767_s19 = scalar_lea.hbm %s2212_s14, 128 }
 0xaca   : > { %p1764_p8 = scmp.ne.s32.totalorder %s2155_s0, %s1763_s24  ;;  %p1768_p1 = scmp.lt.u32.totalorder %s2155_s0, %s2212_s14 }
 0xacb   : > { %p1769_p0 = scmp.lt.u32.totalorder %s1767_s19, %s1763_s24  ;;  %p1771_p6 = scmp.lt.u32.totalorder %s1763_s24, %s2155_s0 }
 0xacc   : > { %p1765_p11 = pnand %p1764_p8, %p2233_p9 }
 0xacd   : > { %p1770_p5 = por %p1769_p0, %p1768_p1 }
 0xace   : > { %p1766_p13 = pneg %p1765_p11 }
 0xacf   : > { %p1772_p10 = por %p1771_p6, %p1770_p5 }
 0xad1   : > { %p1773_p12 = pnand %p1772_p10, %p1766_p13 }
 0xad3   : > { %1776 = shalt.err (!%p1773_p12)
}
 0xad4   : > { %1626 = dma.vmem_to_hbm [thread:$0]  (%p2233_p9), %s2157_s22, 64, %s2155_s0, %s1367_s27  }
 0xad5 PF: > { %s2234_s28 = sld [smem:[#allocation14_spill]]  ;;  %p1638_p2 = scmp.ge.s32.totalorder %s1815_s16, 2 }
 0xad6   : > { %s1392_s17 = sand.u32 1, %s1803_s29  }
 0xad7   : > { %s1393_s25 = scalar_lea.sflag [#allocation7], %s1392_s17 }
 0xadb   : > { %p2235_p3 = scmp.ne.s32.totalorder %s2234_s28, 0 }
 0xadd   : > { %p1633_p4 = pnand %p1638_p2, %p2235_p3 }
 0xadf   : > { %1798 = dma.done.wait (!%p1633_p4), %s1393_s25, 64  }
 0xae0   : > { %1800 = vsyncadd (!%p1633_p4), %s1393_s25, 4294967232  ;;  %s2236_s16 = sld [smem:[#allocation12_spill]]  ;;  %s2237_s21 = sld [smem:[#allocation11_spill]] }
 0xae1   : > { %s2238_s15 = sld [smem:[#allocation13_spill]]  ;;  %s2239_s29 = smov %s1807_s30 }
 0xae6   : > { %p25_p7 = scmp.ge.s32.totalorder %s2236_s16, 4   ;;  %s2240_s30 = smov %s2237_s21 }
 0xae8   :  { %27 = sbr.rel (!%p25_p7) target bundleno = 6 (0x6), region = 121 }
 0xaef   :  { %1398 = vsyncpa [#allocation6], 1 }
 0xaf0   :  { %1400 = vsyncpa [#allocation6 + $0x1], 1 }
 0xaf1   :  { %1401 = vsyncpa [#allocation7], 1 }
 0xaf2   :  { %1403 = vsyncpa [#allocation7 + $0x1], 1 }

</bundles_post_ra>
